<compile_context>
chip_gen: v7x
topology: tpu7x:2x2x1
jax: 0.10.0
libtpu: 0.0.40
codegen_flags: <defaults>
</compile_context>

<pallas_src>
import functools

import jax
import jax.numpy as jnp
from jax import lax
from jax.experimental import pallas as pl
from jax.experimental.pallas import tpu as pltpu


# ----------------------------------------------------------------------------
# Fused forward kernel (one grid step = one batch tile, everything in VMEM)
# ----------------------------------------------------------------------------
def _fused_cnn_kernel(x_ref, w1_ref, b1_ref, w2_ref, b2_ref, s1_ref, s2_ref,
                      wf1_ref, bf1_ref, wf2_ref, bf2_ref, o_ref,
                      *, bt, kk, c2, iw0, nw1, nm1, iw1, nw2, nm2):
    # Static sizes: bt   = batch tile
    #               kk   = conv kernel size (5)
    #               iw0  = input width (28), nw1 = conv1 wide length (24*28)
    #               nm1  = window-max length after conv1 (nw1 - iw0 - 1)
    #               iw1  = pooled1 width (12), nw2 = conv2 wide length (8*12)
    #               nm2  = window-max length after conv2 (nw2 - iw1 - 1)
    x = x_ref[...]                       # (bt, 1, 28*28 + kk-1)  bf16
    w1 = w1_ref[...]                     # (C1, kk*kk)            bf16
    b1 = b1_ref[...]                     # (C1, 1)                f32
    w2 = w2_ref[...]                     # (C2, kk*kk*C1)         bf16
    b2 = b2_ref[...]                     # (C2, 1)                f32
    s1 = s1_ref[...]                     # (nm1, 144 + kk-1)      bf16 (0/1)
    s2 = s2_ref[...]                     # (nm2, 16)              bf16 (0/1)
    wf1 = wf1_ref[...]                   # (256, mlp)             bf16
    bf1 = bf1_ref[...]                   # (1, mlp)               f32
    wf2 = wf2_ref[...]                   # (mlp, 10)              f32
    bf2 = bf2_ref[...]                   # (1, 10)                f32

    feats = []
    for b in range(bt):                  # small static unroll over the tile
        xb = x[b]                                                  # (1, WX) bf16

        # ---- conv1 + bias + ReLU: shifted-slice im2col -> one MXU matmul ----
        taps = [xb[:, di * iw0 + dj: di * iw0 + dj + nw1]
                for di in range(kk) for dj in range(kk)]
        im1 = jnp.concatenate(taps, axis=0)                        # (25, nw1)
        y1 = jnp.dot(w1, im1, preferred_element_type=jnp.float32)  # (C1, nw1) f32
        y1 = jnp.maximum(y1 + b1, 0.0)

        # ---- 2x2 max-pool #1: window max + 0/1 selection matmul --------------
        a1 = jnp.maximum(y1[:, :nw1 - 1], y1[:, 1:])               # max over w-pairs
        wmax1 = jnp.maximum(a1[:, :nm1], a1[:, iw0:iw0 + nm1])     # max over h-pairs
        pool1 = jnp.dot(wmax1.astype(jnp.bfloat16), s1,
                        preferred_element_type=jnp.float32)        # (C1, 144+pad)
        pool1 = pool1.astype(jnp.bfloat16)

        # ---- conv2 + bias + ReLU ---------------------------------------------
        taps2 = [pool1[:, di * iw1 + dj: di * iw1 + dj + nw2]
                 for di in range(kk) for dj in range(kk)]
        im2 = jnp.concatenate(taps2, axis=0)                       # (25*C1, nw2)
        y2 = jnp.dot(w2, im2, preferred_element_type=jnp.float32)  # (C2, nw2) f32
        y2 = jnp.maximum(y2 + b2, 0.0)

        # ---- 2x2 max-pool #2 -------------------------------------------------
        a2 = jnp.maximum(y2[:, :nw2 - 1], y2[:, 1:])
        wmax2 = jnp.maximum(a2[:, :nm2], a2[:, iw1:iw1 + nm2])
        pool2 = jnp.dot(wmax2.astype(jnp.bfloat16), s2,
                        preferred_element_type=jnp.float32)        # (C2, 16) f32

        # ---- flatten in PyTorch (C, H, W) order: lane index = ch*16 + q ------
        feats.append(jnp.concatenate([pool2[ch:ch + 1, :] for ch in range(c2)],
                                     axis=1))                      # (1, 16*C2)

    f = jnp.concatenate(feats, axis=0)                             # (bt, 256)

    # ---- fc1 + ReLU (bf16 MXU), fc2 (f32), fused log_softmax epilogue --------
    h = jnp.dot(f.astype(jnp.bfloat16), wf1,
                preferred_element_type=jnp.float32) + bf1
    h = jnp.maximum(h, 0.0)                                        # (bt, mlp)
    logits = jnp.dot(h, wf2, preferred_element_type=jnp.float32) + bf2
    mx = jnp.max(logits, axis=-1, keepdims=True)
    sh = logits - mx
    lse = jnp.log(jnp.sum(jnp.exp(sh), axis=-1, keepdims=True))
    o_ref[...] = (sh - lse)[:, None, :]                            # (bt, 1, 10)


# ----------------------------------------------------------------------------
# Boundary helpers (plain JAX, run once on weights / once on the input)
# ----------------------------------------------------------------------------
def _pool_select(in_w, out_w, n_rows, pad_cols):
    """0/1 matrix (n_rows, out_w*out_w + pad_cols) that picks the window-start
    rows p = 2u*in_w + 2v of a 2x2/stride-2 max-pool from the window-max
    array, and appends `pad_cols` zero columns as flat zero-padding so the
    next conv's shifted reads stay in bounds."""
    q = jnp.arange(out_w * out_w)
    p_sel = 2 * (q // out_w) * in_w + 2 * (q % out_w)
    sel = (jnp.arange(n_rows)[:, None] == p_sel[None, :]).astype(jnp.float32)
    if pad_cols:
        sel = jnp.pad(sel, ((0, 0), (0, pad_cols)))
    return sel.astype(jnp.bfloat16)


def simple_cnn_forward(x, params, *, batch_tile=1):
    """x: (B, 1, 28, 28) f32 -> (B, 10) f32 log-probabilities."""
    B = x.shape[0]
    assert x.shape[1:] == (1, 28, 28), x.shape
    assert B % batch_tile == 0
    BT = batch_tile

    C1, _, KK, _ = params["w1"].shape
    C2 = params["w2"].shape[0]
    MLP = params["wf1"].shape[1]
    H0 = W0 = 28
    OW1 = W0 - KK + 1                 # 24
    IW1 = OW1 // 2                    # 12   (pooled1 width)
    OW2 = IW1 - KK + 1                # 8
    W2S = OW2 // 2                    # 4    (pooled2 width)
    NW1 = OW1 * W0                    # 672  conv1 "wide" flat length
    NM1 = NW1 - W0 - 1                # 643  window-max length
    NW2 = OW2 * IW1                   # 96
    NM2 = NW2 - IW1 - 1               # 83
    Q2 = W2S * W2S                    # 16
    FACT = Q2 * C2                    # 256
    PADX = KK - 1                     # 4
    WX = H0 * W0 + PADX               # 788
    Q1P = IW1 * IW1 + PADX            # 148

    # One-time weight layout prep (matches the in-kernel im2col row ordering).
    w1m = params["w1"].reshape(C1, KK * KK).astype(jnp.bfloat16)
    b1c = params["b1"].reshape(C1, 1).astype(jnp.float32)
    w2m = jnp.transpose(params["w2"], (0, 2, 3, 1)).reshape(
        C2, KK * KK * C1).astype(jnp.bfloat16)
    b2c = params["b2"].reshape(C2, 1).astype(jnp.float32)
    wf1 = params["wf1"].astype(jnp.bfloat16)            # (256, MLP)
    bf1 = params["bf1"].reshape(1, MLP).astype(jnp.float32)
    wf2 = params["wf2"].astype(jnp.float32)              # (MLP, 10)
    bf2 = params["bf2"].reshape(1, -1).astype(jnp.float32)
    s1 = _pool_select(W0, IW1, NM1, PADX)                # (643, 148) bf16
    s2 = _pool_select(IW1, W2S, NM2, 0)                  # (83, 16)   bf16

    # Flat input, padded by kk-1 so every shifted slice stays in bounds.
    xf = jnp.pad(x.reshape(B, 1, H0 * W0),
                 ((0, 0), (0, 0), (0, PADX))).astype(jnp.bfloat16)

    kernel = functools.partial(
        _fused_cnn_kernel, bt=BT, kk=KK, c2=C2,
        iw0=W0, nw1=NW1, nm1=NM1, iw1=IW1, nw2=NW2, nm2=NM2)

    out = pl.pallas_call(
        kernel,
        out_shape=jax.ShapeDtypeStruct((B, 1, 10), jnp.float32),
        grid=(B // BT,),
        in_specs=[
            pl.BlockSpec((BT, 1, WX), lambda i: (i, 0, 0)),        # input tile
            pl.BlockSpec((C1, KK * KK), lambda i: (0, 0)),         # conv1 w
            pl.BlockSpec((C1, 1), lambda i: (0, 0)),               # conv1 b
            pl.BlockSpec((C2, KK * KK * C1), lambda i: (0, 0)),    # conv2 w
            pl.BlockSpec((C2, 1), lambda i: (0, 0)),               # conv2 b
            pl.BlockSpec((NM1, Q1P), lambda i: (0, 0)),            # pool1 select
            pl.BlockSpec((NM2, Q2), lambda i: (0, 0)),             # pool2 select
            pl.BlockSpec((FACT, MLP), lambda i: (0, 0)),           # fc1 w
            pl.BlockSpec((1, MLP), lambda i: (0, 0)),              # fc1 b
            pl.BlockSpec((MLP, 10), lambda i: (0, 0)),             # fc2 w
            pl.BlockSpec((1, 10), lambda i: (0, 0)),               # fc2 b
        ],
        out_specs=pl.BlockSpec((BT, 1, 10), lambda i: (i, 0, 0)),
        compiler_params=pltpu.CompilerParams(
            dimension_semantics=("parallel",)),                    # 2 TCs on v7x
    )(xf, w1m, b1c, w2m, b2c, s1, s2, wf1, bf1, wf2, bf2)
    return out.reshape(B, 10)


# ----------------------------------------------------------------------------
# Pure-JAX (f32) reference for the correctness check
# ----------------------------------------------------------------------------
def reference_forward(x, params):
    def conv(x, w, b):
        y = lax.conv_general_dilated(x, w, (1, 1), [(0, 0), (0, 0)],
                                     dimension_numbers=("NCHW", "OIHW", "NCHW"))
        return jax.nn.relu(y + b[None, :, None, None])

    def pool(x):
        return lax.reduce_window(x, -jnp.inf, lax.max,
                                 (1, 1, 2, 2), (1, 1, 2, 2), "VALID")

    y = pool(conv(x, params["w1"], params["b1"]))
    y = pool(conv(y, params["w2"], params["b2"]))
    y = y.reshape(y.shape[0], -1)
    y = jax.nn.relu(y @ params["wf1"] + params["bf1"])
    y = y @ params["wf2"] + params["bf2"]
    return jax.nn.log_softmax(y, axis=1)


def init_params(key, channels1=8, channels2=16, kernel_size=5, mlp_units=32):
    factor = 4 * 4 * channels2
    ks = jax.random.split(key, 8)

    def u(k, shape, fan_in):
        bound = 1.0 / jnp.sqrt(jnp.float32(fan_in))
        return jax.random.uniform(k, shape, jnp.float32, -bound, bound)

    kk = kernel_size
    return {
        "w1": u(ks[0], (channels1, 1, kk, kk), 1 * kk * kk),
        "b1": u(ks[1], (channels1,), 1 * kk * kk),
        "w2": u(ks[2], (channels2, channels1, kk, kk), channels1 * kk * kk),
        "b2": u(ks[3], (channels2,), channels1 * kk * kk),
        "wf1": u(ks[4], (factor, mlp_units), factor),
        "bf1": u(ks[5], (mlp_units,), factor),
        "wf2": u(ks[6], (mlp_units, 10), mlp_units),
        "bf2": u(ks[7], (10,), mlp_units),
    }


if __name__ == "__main__":
    key = jax.random.PRNGKey(0)
    kp, kx = jax.random.split(key)
    B = 2
    params = init_params(kp, channels1=8, channels2=16, kernel_size=5,
                         mlp_units=32)
    x = jax.random.normal(kx, (B, 1, 28, 28), jnp.float32)

    fwd = jax.jit(simple_cnn_forward)
    out = jax.block_until_ready(fwd(x, params))
    assert out.shape == (B, 10), out.shape

    ref = jax.block_until_ready(reference_forward(x, params))
    if not jnp.allclose(out, ref, atol=3e-2, rtol=3e-2):
        raise AssertionError(
            "mismatch vs reference: max abs diff "
            f"{float(jnp.max(jnp.abs(out - ref)))}")
    print("KERNEL_OK")
</pallas_src>

<mosaic_0001>
module attributes {stable_mosaic.version = 11 : i64} {
  func.func @_fused_cnn_kernel(%arg0: i32, %arg1: memref<1x1x788xbf16, #tpu.memory_space<vmem>>, %arg2: memref<8x25xbf16, #tpu.memory_space<vmem>>, %arg3: memref<8x1xf32, #tpu.memory_space<vmem>>, %arg4: memref<16x200xbf16, #tpu.memory_space<vmem>>, %arg5: memref<16x1xf32, #tpu.memory_space<vmem>>, %arg6: memref<643x148xbf16, #tpu.memory_space<vmem>>, %arg7: memref<83x16xbf16, #tpu.memory_space<vmem>>, %arg8: memref<256x32xbf16, #tpu.memory_space<vmem>>, %arg9: memref<1x32xf32, #tpu.memory_space<vmem>>, %arg10: memref<32x10xf32, #tpu.memory_space<vmem>>, %arg11: memref<1x10xf32, #tpu.memory_space<vmem>>, %arg12: memref<1x1x10xf32, #tpu.memory_space<vmem>>) attributes {dimension_semantics = [#tpu.dimension_semantics<parallel>], iteration_bounds = array<i64: 2>, scalar_prefetch = 0 : i64, scratch_operands = 0 : i64, tpu.core_type = #tpu.core_type<tc>, window_params = [{transform_indices = @transform_0, window_bounds = array<i64: 1, 1, 788>}, {pipeline_mode = #tpu.pipeline_mode<synchronous>, transform_indices = @transform_1, window_bounds = array<i64: 8, 25>}, {pipeline_mode = #tpu.pipeline_mode<synchronous>, transform_indices = @transform_2, window_bounds = array<i64: 8, 1>}, {pipeline_mode = #tpu.pipeline_mode<synchronous>, transform_indices = @transform_3, window_bounds = array<i64: 16, 200>}, {pipeline_mode = #tpu.pipeline_mode<synchronous>, transform_indices = @transform_4, window_bounds = array<i64: 16, 1>}, {pipeline_mode = #tpu.pipeline_mode<synchronous>, transform_indices = @transform_5, window_bounds = array<i64: 643, 148>}, {pipeline_mode = #tpu.pipeline_mode<synchronous>, transform_indices = @transform_6, window_bounds = array<i64: 83, 16>}, {pipeline_mode = #tpu.pipeline_mode<synchronous>, transform_indices = @transform_7, window_bounds = array<i64: 256, 32>}, {pipeline_mode = #tpu.pipeline_mode<synchronous>, transform_indices = @transform_8, window_bounds = array<i64: 1, 32>}, {pipeline_mode = #tpu.pipeline_mode<synchronous>, transform_indices = @transform_9, window_bounds = array<i64: 32, 10>}, {pipeline_mode = #tpu.pipeline_mode<synchronous>, transform_indices = @transform_10, window_bounds = array<i64: 1, 10>}, {transform_indices = @transform_11, window_bounds = array<i64: 1, 1, 10>}]} {
    %c0 = arith.constant 0 : index
    %c0_0 = arith.constant 0 : index
    %c0_1 = arith.constant 0 : index
    %0 = vector.load %arg1[%c0, %c0_0, %c0_1] : memref<1x1x788xbf16, #tpu.memory_space<vmem>>, vector<1x1x788xbf16>
    %c0_2 = arith.constant 0 : index
    %c0_3 = arith.constant 0 : index
    %1 = vector.load %arg2[%c0_2, %c0_3] : memref<8x25xbf16, #tpu.memory_space<vmem>>, vector<8x25xbf16>
    %c0_4 = arith.constant 0 : index
    %c0_5 = arith.constant 0 : index
    %2 = vector.load %arg3[%c0_4, %c0_5] : memref<8x1xf32, #tpu.memory_space<vmem>>, vector<8x1xf32>
    %c0_6 = arith.constant 0 : index
    %c0_7 = arith.constant 0 : index
    %3 = vector.load %arg4[%c0_6, %c0_7] : memref<16x200xbf16, #tpu.memory_space<vmem>>, vector<16x200xbf16>
    %c0_8 = arith.constant 0 : index
    %c0_9 = arith.constant 0 : index
    %4 = vector.load %arg5[%c0_8, %c0_9] : memref<16x1xf32, #tpu.memory_space<vmem>>, vector<16x1xf32>
    %c0_10 = arith.constant 0 : index
    %c0_11 = arith.constant 0 : index
    %5 = vector.load %arg6[%c0_10, %c0_11] : memref<643x148xbf16, #tpu.memory_space<vmem>>, vector<643x148xbf16>
    %c0_12 = arith.constant 0 : index
    %c0_13 = arith.constant 0 : index
    %6 = vector.load %arg7[%c0_12, %c0_13] : memref<83x16xbf16, #tpu.memory_space<vmem>>, vector<83x16xbf16>
    %c0_14 = arith.constant 0 : index
    %c0_15 = arith.constant 0 : index
    %7 = vector.load %arg8[%c0_14, %c0_15] : memref<256x32xbf16, #tpu.memory_space<vmem>>, vector<256x32xbf16>
    %c0_16 = arith.constant 0 : index
    %c0_17 = arith.constant 0 : index
    %8 = vector.load %arg9[%c0_16, %c0_17] : memref<1x32xf32, #tpu.memory_space<vmem>>, vector<1x32xf32>
    %c0_18 = arith.constant 0 : index
    %c0_19 = arith.constant 0 : index
    %9 = vector.load %arg10[%c0_18, %c0_19] : memref<32x10xf32, #tpu.memory_space<vmem>>, vector<32x10xf32>
    %c0_20 = arith.constant 0 : index
    %c0_21 = arith.constant 0 : index
    %10 = vector.load %arg11[%c0_20, %c0_21] : memref<1x10xf32, #tpu.memory_space<vmem>>, vector<1x10xf32>
    %11 = vector.shape_cast %0 : vector<1x1x788xbf16> to vector<1x788xbf16>
    %12 = vector.extract_strided_slice %11 {offsets = [0, 0], sizes = [1, 672], strides = [1, 1]} : vector<1x788xbf16> to vector<1x672xbf16>
    %13 = vector.extract_strided_slice %11 {offsets = [0, 1], sizes = [1, 672], strides = [1, 1]} : vector<1x788xbf16> to vector<1x672xbf16>
    %14 = vector.extract_strided_slice %11 {offsets = [0, 2], sizes = [1, 672], strides = [1, 1]} : vector<1x788xbf16> to vector<1x672xbf16>
    %15 = vector.extract_strided_slice %11 {offsets = [0, 3], sizes = [1, 672], strides = [1, 1]} : vector<1x788xbf16> to vector<1x672xbf16>
    %16 = vector.extract_strided_slice %11 {offsets = [0, 4], sizes = [1, 672], strides = [1, 1]} : vector<1x788xbf16> to vector<1x672xbf16>
    %17 = vector.extract_strided_slice %11 {offsets = [0, 28], sizes = [1, 672], strides = [1, 1]} : vector<1x788xbf16> to vector<1x672xbf16>
    %18 = vector.extract_strided_slice %11 {offsets = [0, 29], sizes = [1, 672], strides = [1, 1]} : vector<1x788xbf16> to vector<1x672xbf16>
    %19 = vector.extract_strided_slice %11 {offsets = [0, 30], sizes = [1, 672], strides = [1, 1]} : vector<1x788xbf16> to vector<1x672xbf16>
    %20 = vector.extract_strided_slice %11 {offsets = [0, 31], sizes = [1, 672], strides = [1, 1]} : vector<1x788xbf16> to vector<1x672xbf16>
    %21 = vector.extract_strided_slice %11 {offsets = [0, 32], sizes = [1, 672], strides = [1, 1]} : vector<1x788xbf16> to vector<1x672xbf16>
    %22 = vector.extract_strided_slice %11 {offsets = [0, 56], sizes = [1, 672], strides = [1, 1]} : vector<1x788xbf16> to vector<1x672xbf16>
    %23 = vector.extract_strided_slice %11 {offsets = [0, 57], sizes = [1, 672], strides = [1, 1]} : vector<1x788xbf16> to vector<1x672xbf16>
    %24 = vector.extract_strided_slice %11 {offsets = [0, 58], sizes = [1, 672], strides = [1, 1]} : vector<1x788xbf16> to vector<1x672xbf16>
    %25 = vector.extract_strided_slice %11 {offsets = [0, 59], sizes = [1, 672], strides = [1, 1]} : vector<1x788xbf16> to vector<1x672xbf16>
    %26 = vector.extract_strided_slice %11 {offsets = [0, 60], sizes = [1, 672], strides = [1, 1]} : vector<1x788xbf16> to vector<1x672xbf16>
    %27 = vector.extract_strided_slice %11 {offsets = [0, 84], sizes = [1, 672], strides = [1, 1]} : vector<1x788xbf16> to vector<1x672xbf16>
    %28 = vector.extract_strided_slice %11 {offsets = [0, 85], sizes = [1, 672], strides = [1, 1]} : vector<1x788xbf16> to vector<1x672xbf16>
    %29 = vector.extract_strided_slice %11 {offsets = [0, 86], sizes = [1, 672], strides = [1, 1]} : vector<1x788xbf16> to vector<1x672xbf16>
    %30 = vector.extract_strided_slice %11 {offsets = [0, 87], sizes = [1, 672], strides = [1, 1]} : vector<1x788xbf16> to vector<1x672xbf16>
    %31 = vector.extract_strided_slice %11 {offsets = [0, 88], sizes = [1, 672], strides = [1, 1]} : vector<1x788xbf16> to vector<1x672xbf16>
    %32 = vector.extract_strided_slice %11 {offsets = [0, 112], sizes = [1, 672], strides = [1, 1]} : vector<1x788xbf16> to vector<1x672xbf16>
    %33 = vector.extract_strided_slice %11 {offsets = [0, 113], sizes = [1, 672], strides = [1, 1]} : vector<1x788xbf16> to vector<1x672xbf16>
    %34 = vector.extract_strided_slice %11 {offsets = [0, 114], sizes = [1, 672], strides = [1, 1]} : vector<1x788xbf16> to vector<1x672xbf16>
    %35 = vector.extract_strided_slice %11 {offsets = [0, 115], sizes = [1, 672], strides = [1, 1]} : vector<1x788xbf16> to vector<1x672xbf16>
    %36 = vector.extract_strided_slice %11 {offsets = [0, 116], sizes = [1, 672], strides = [1, 1]} : vector<1x788xbf16> to vector<1x672xbf16>
    %37 = tpu.concatenate %12, %13, %14, %15, %16, %17, %18, %19, %20, %21, %22, %23, %24, %25, %26, %27 in 0 : vector<1x672xbf16>, vector<1x672xbf16>, vector<1x672xbf16>, vector<1x672xbf16>, vector<1x672xbf16>, vector<1x672xbf16>, vector<1x672xbf16>, vector<1x672xbf16>, vector<1x672xbf16>, vector<1x672xbf16>, vector<1x672xbf16>, vector<1x672xbf16>, vector<1x672xbf16>, vector<1x672xbf16>, vector<1x672xbf16>, vector<1x672xbf16> -> vector<16x672xbf16>
    %38 = tpu.concatenate %28, %29, %30, %31, %32, %33, %34, %35, %36 in 0 : vector<1x672xbf16>, vector<1x672xbf16>, vector<1x672xbf16>, vector<1x672xbf16>, vector<1x672xbf16>, vector<1x672xbf16>, vector<1x672xbf16>, vector<1x672xbf16>, vector<1x672xbf16> -> vector<9x672xbf16>
    %39 = tpu.concatenate %37, %38 in 0 : vector<16x672xbf16>, vector<9x672xbf16> -> vector<25x672xbf16>
    %cst = arith.constant dense<0.000000e+00> : vector<8x672xf32>
    %40 = tpu.matmul %1, %39, %cst {dimension_numbers = #tpu.dot_dimension_numbers<[1], [0], [0], [1], [0, 0, 1, 1], [], []>} : vector<8x25xbf16>, vector<25x672xbf16>, vector<8x672xf32> -> vector<8x672xf32>
    %41 = vector.broadcast %2 : vector<8x1xf32> to vector<8x672xf32>
    %42 = arith.addf %40, %41 : vector<8x672xf32>
    %cst_22 = arith.constant 0.000000e+00 : f32
    %43 = vector.broadcast %cst_22 : f32 to vector<8x672xf32>
    %44 = arith.maximumf %42, %43 : vector<8x672xf32>
    %45 = vector.extract_strided_slice %44 {offsets = [0, 0], sizes = [8, 671], strides = [1, 1]} : vector<8x672xf32> to vector<8x671xf32>
    %46 = vector.extract_strided_slice %44 {offsets = [0, 1], sizes = [8, 671], strides = [1, 1]} : vector<8x672xf32> to vector<8x671xf32>
    %47 = arith.maximumf %45, %46 : vector<8x671xf32>
    %48 = vector.extract_strided_slice %47 {offsets = [0, 0], sizes = [8, 643], strides = [1, 1]} : vector<8x671xf32> to vector<8x643xf32>
    %49 = vector.extract_strided_slice %47 {offsets = [0, 28], sizes = [8, 643], strides = [1, 1]} : vector<8x671xf32> to vector<8x643xf32>
    %50 = arith.maximumf %48, %49 : vector<8x643xf32>
    %51 = arith.truncf %50 : vector<8x643xf32> to vector<8x643xbf16>
    %cst_23 = arith.constant dense<0.000000e+00> : vector<8x148xf32>
    %52 = tpu.matmul %51, %5, %cst_23 {dimension_numbers = #tpu.dot_dimension_numbers<[1], [0], [0], [1], [0, 0, 1, 1], [], []>} : vector<8x643xbf16>, vector<643x148xbf16>, vector<8x148xf32> -> vector<8x148xf32>
    %53 = arith.truncf %52 : vector<8x148xf32> to vector<8x148xbf16>
    %54 = vector.extract_strided_slice %53 {offsets = [0, 0], sizes = [8, 96], strides = [1, 1]} : vector<8x148xbf16> to vector<8x96xbf16>
    %55 = vector.extract_strided_slice %53 {offsets = [0, 1], sizes = [8, 96], strides = [1, 1]} : vector<8x148xbf16> to vector<8x96xbf16>
    %56 = vector.extract_strided_slice %53 {offsets = [0, 2], sizes = [8, 96], strides = [1, 1]} : vector<8x148xbf16> to vector<8x96xbf16>
    %57 = vector.extract_strided_slice %53 {offsets = [0, 3], sizes = [8, 96], strides = [1, 1]} : vector<8x148xbf16> to vector<8x96xbf16>
    %58 = vector.extract_strided_slice %53 {offsets = [0, 4], sizes = [8, 96], strides = [1, 1]} : vector<8x148xbf16> to vector<8x96xbf16>
    %59 = vector.extract_strided_slice %53 {offsets = [0, 12], sizes = [8, 96], strides = [1, 1]} : vector<8x148xbf16> to vector<8x96xbf16>
    %60 = vector.extract_strided_slice %53 {offsets = [0, 13], sizes = [8, 96], strides = [1, 1]} : vector<8x148xbf16> to vector<8x96xbf16>
    %61 = vector.extract_strided_slice %53 {offsets = [0, 14], sizes = [8, 96], strides = [1, 1]} : vector<8x148xbf16> to vector<8x96xbf16>
    %62 = vector.extract_strided_slice %53 {offsets = [0, 15], sizes = [8, 96], strides = [1, 1]} : vector<8x148xbf16> to vector<8x96xbf16>
    %63 = vector.extract_strided_slice %53 {offsets = [0, 16], sizes = [8, 96], strides = [1, 1]} : vector<8x148xbf16> to vector<8x96xbf16>
    %64 = vector.extract_strided_slice %53 {offsets = [0, 24], sizes = [8, 96], strides = [1, 1]} : vector<8x148xbf16> to vector<8x96xbf16>
    %65 = vector.extract_strided_slice %53 {offsets = [0, 25], sizes = [8, 96], strides = [1, 1]} : vector<8x148xbf16> to vector<8x96xbf16>
    %66 = vector.extract_strided_slice %53 {offsets = [0, 26], sizes = [8, 96], strides = [1, 1]} : vector<8x148xbf16> to vector<8x96xbf16>
    %67 = vector.extract_strided_slice %53 {offsets = [0, 27], sizes = [8, 96], strides = [1, 1]} : vector<8x148xbf16> to vector<8x96xbf16>
    %68 = vector.extract_strided_slice %53 {offsets = [0, 28], sizes = [8, 96], strides = [1, 1]} : vector<8x148xbf16> to vector<8x96xbf16>
    %69 = vector.extract_strided_slice %53 {offsets = [0, 36], sizes = [8, 96], strides = [1, 1]} : vector<8x148xbf16> to vector<8x96xbf16>
    %70 = vector.extract_strided_slice %53 {offsets = [0, 37], sizes = [8, 96], strides = [1, 1]} : vector<8x148xbf16> to vector<8x96xbf16>
    %71 = vector.extract_strided_slice %53 {offsets = [0, 38], sizes = [8, 96], strides = [1, 1]} : vector<8x148xbf16> to vector<8x96xbf16>
    %72 = vector.extract_strided_slice %53 {offsets = [0, 39], sizes = [8, 96], strides = [1, 1]} : vector<8x148xbf16> to vector<8x96xbf16>
    %73 = vector.extract_strided_slice %53 {offsets = [0, 40], sizes = [8, 96], strides = [1, 1]} : vector<8x148xbf16> to vector<8x96xbf16>
    %74 = vector.extract_strided_slice %53 {offsets = [0, 48], sizes = [8, 96], strides = [1, 1]} : vector<8x148xbf16> to vector<8x96xbf16>
    %75 = vector.extract_strided_slice %53 {offsets = [0, 49], sizes = [8, 96], strides = [1, 1]} : vector<8x148xbf16> to vector<8x96xbf16>
    %76 = vector.extract_strided_slice %53 {offsets = [0, 50], sizes = [8, 96], strides = [1, 1]} : vector<8x148xbf16> to vector<8x96xbf16>
    %77 = vector.extract_strided_slice %53 {offsets = [0, 51], sizes = [8, 96], strides = [1, 1]} : vector<8x148xbf16> to vector<8x96xbf16>
    %78 = vector.extract_strided_slice %53 {offsets = [0, 52], sizes = [8, 96], strides = [1, 1]} : vector<8x148xbf16> to vector<8x96xbf16>
    %79 = tpu.concatenate %54, %55, %56, %57, %58, %59, %60, %61, %62, %63, %64, %65, %66, %67, %68, %69 in 0 : vector<8x96xbf16>, vector<8x96xbf16>, vector<8x96xbf16>, vector<8x96xbf16>, vector<8x96xbf16>, vector<8x96xbf16>, vector<8x96xbf16>, vector<8x96xbf16>, vector<8x96xbf16>, vector<8x96xbf16>, vector<8x96xbf16>, vector<8x96xbf16>, vector<8x96xbf16>, vector<8x96xbf16>, vector<8x96xbf16>, vector<8x96xbf16> -> vector<128x96xbf16>
    %80 = tpu.concatenate %70, %71, %72, %73, %74, %75, %76, %77, %78 in 0 : vector<8x96xbf16>, vector<8x96xbf16>, vector<8x96xbf16>, vector<8x96xbf16>, vector<8x96xbf16>, vector<8x96xbf16>, vector<8x96xbf16>, vector<8x96xbf16>, vector<8x96xbf16> -> vector<72x96xbf16>
    %81 = tpu.concatenate %79, %80 in 0 : vector<128x96xbf16>, vector<72x96xbf16> -> vector<200x96xbf16>
    %cst_24 = arith.constant dense<0.000000e+00> : vector<16x96xf32>
    %82 = tpu.matmul %3, %81, %cst_24 {dimension_numbers = #tpu.dot_dimension_numbers<[1], [0], [0], [1], [0, 0, 1, 1], [], []>} : vector<16x200xbf16>, vector<200x96xbf16>, vector<16x96xf32> -> vector<16x96xf32>
    %83 = vector.broadcast %4 : vector<16x1xf32> to vector<16x96xf32>
    %84 = arith.addf %82, %83 : vector<16x96xf32>
    %cst_25 = arith.constant 0.000000e+00 : f32
    %85 = vector.broadcast %cst_25 : f32 to vector<16x96xf32>
    %86 = arith.maximumf %84, %85 : vector<16x96xf32>
    %87 = vector.extract_strided_slice %86 {offsets = [0, 0], sizes = [16, 95], strides = [1, 1]} : vector<16x96xf32> to vector<16x95xf32>
    %88 = vector.extract_strided_slice %86 {offsets = [0, 1], sizes = [16, 95], strides = [1, 1]} : vector<16x96xf32> to vector<16x95xf32>
    %89 = arith.maximumf %87, %88 : vector<16x95xf32>
    %90 = vector.extract_strided_slice %89 {offsets = [0, 0], sizes = [16, 83], strides = [1, 1]} : vector<16x95xf32> to vector<16x83xf32>
    %91 = vector.extract_strided_slice %89 {offsets = [0, 12], sizes = [16, 83], strides = [1, 1]} : vector<16x95xf32> to vector<16x83xf32>
    %92 = arith.maximumf %90, %91 : vector<16x83xf32>
    %93 = arith.truncf %92 : vector<16x83xf32> to vector<16x83xbf16>
    %cst_26 = arith.constant dense<0.000000e+00> : vector<16x16xf32>
    %94 = tpu.matmul %93, %6, %cst_26 {dimension_numbers = #tpu.dot_dimension_numbers<[1], [0], [0], [1], [0, 0, 1, 1], [], []>} : vector<16x83xbf16>, vector<83x16xbf16>, vector<16x16xf32> -> vector<16x16xf32>
    %95 = vector.extract_strided_slice %94 {offsets = [0, 0], sizes = [1, 16], strides = [1, 1]} : vector<16x16xf32> to vector<1x16xf32>
    %96 = vector.extract_strided_slice %94 {offsets = [1, 0], sizes = [1, 16], strides = [1, 1]} : vector<16x16xf32> to vector<1x16xf32>
    %97 = vector.extract_strided_slice %94 {offsets = [2, 0], sizes = [1, 16], strides = [1, 1]} : vector<16x16xf32> to vector<1x16xf32>
    %98 = vector.extract_strided_slice %94 {offsets = [3, 0], sizes = [1, 16], strides = [1, 1]} : vector<16x16xf32> to vector<1x16xf32>
    %99 = vector.extract_strided_slice %94 {offsets = [4, 0], sizes = [1, 16], strides = [1, 1]} : vector<16x16xf32> to vector<1x16xf32>
    %100 = vector.extract_strided_slice %94 {offsets = [5, 0], sizes = [1, 16], strides = [1, 1]} : vector<16x16xf32> to vector<1x16xf32>
    %101 = vector.extract_strided_slice %94 {offsets = [6, 0], sizes = [1, 16], strides = [1, 1]} : vector<16x16xf32> to vector<1x16xf32>
    %102 = vector.extract_strided_slice %94 {offsets = [7, 0], sizes = [1, 16], strides = [1, 1]} : vector<16x16xf32> to vector<1x16xf32>
    %103 = vector.extract_strided_slice %94 {offsets = [8, 0], sizes = [1, 16], strides = [1, 1]} : vector<16x16xf32> to vector<1x16xf32>
    %104 = vector.extract_strided_slice %94 {offsets = [9, 0], sizes = [1, 16], strides = [1, 1]} : vector<16x16xf32> to vector<1x16xf32>
    %105 = vector.extract_strided_slice %94 {offsets = [10, 0], sizes = [1, 16], strides = [1, 1]} : vector<16x16xf32> to vector<1x16xf32>
    %106 = vector.extract_strided_slice %94 {offsets = [11, 0], sizes = [1, 16], strides = [1, 1]} : vector<16x16xf32> to vector<1x16xf32>
    %107 = vector.extract_strided_slice %94 {offsets = [12, 0], sizes = [1, 16], strides = [1, 1]} : vector<16x16xf32> to vector<1x16xf32>
    %108 = vector.extract_strided_slice %94 {offsets = [13, 0], sizes = [1, 16], strides = [1, 1]} : vector<16x16xf32> to vector<1x16xf32>
    %109 = vector.extract_strided_slice %94 {offsets = [14, 0], sizes = [1, 16], strides = [1, 1]} : vector<16x16xf32> to vector<1x16xf32>
    %110 = vector.extract_strided_slice %94 {offsets = [15, 0], sizes = [1, 16], strides = [1, 1]} : vector<16x16xf32> to vector<1x16xf32>
    %111 = tpu.concatenate %95, %96, %97, %98, %99, %100, %101, %102, %103, %104, %105, %106, %107, %108, %109, %110 in 1 : vector<1x16xf32>, vector<1x16xf32>, vector<1x16xf32>, vector<1x16xf32>, vector<1x16xf32>, vector<1x16xf32>, vector<1x16xf32>, vector<1x16xf32>, vector<1x16xf32>, vector<1x16xf32>, vector<1x16xf32>, vector<1x16xf32>, vector<1x16xf32>, vector<1x16xf32>, vector<1x16xf32>, vector<1x16xf32> -> vector<1x256xf32>
    %112 = arith.truncf %111 : vector<1x256xf32> to vector<1x256xbf16>
    %cst_27 = arith.constant dense<0.000000e+00> : vector<1x32xf32>
    %113 = tpu.matmul %112, %7, %cst_27 {dimension_numbers = #tpu.dot_dimension_numbers<[1], [0], [0], [1], [0, 0, 1, 1], [], []>} : vector<1x256xbf16>, vector<256x32xbf16>, vector<1x32xf32> -> vector<1x32xf32>
    %114 = arith.addf %113, %8 : vector<1x32xf32>
    %cst_28 = arith.constant 0.000000e+00 : f32
    %115 = vector.broadcast %cst_28 : f32 to vector<1x32xf32>
    %116 = arith.maximumf %114, %115 : vector<1x32xf32>
    %cst_29 = arith.constant dense<0.000000e+00> : vector<1x10xf32>
    %117 = tpu.matmul %116, %9, %cst_29 {dimension_numbers = #tpu.dot_dimension_numbers<[1], [0], [0], [1], [0, 0, 1, 1], [], []>} : vector<1x32xf32>, vector<32x10xf32>, vector<1x10xf32> -> vector<1x10xf32>
    %118 = arith.addf %117, %10 : vector<1x10xf32>
    %cst_30 = arith.constant dense<0xFF800000> : vector<1xf32>
    %119 = vector.multi_reduction <maximumf>, %118, %cst_30 [1] : vector<1x10xf32> to vector<1xf32>
    %120 = vector.shape_cast %119 : vector<1xf32> to vector<1x1xf32>
    %121 = vector.broadcast %120 : vector<1x1xf32> to vector<1x10xf32>
    %122 = arith.subf %118, %121 : vector<1x10xf32>
    %123 = math.exp %122 : vector<1x10xf32>
    %cst_31 = arith.constant dense<0.000000e+00> : vector<1xf32>
    %124 = vector.multi_reduction <add>, %123, %cst_31 [1] : vector<1x10xf32> to vector<1xf32>
    %125 = vector.shape_cast %124 : vector<1xf32> to vector<1x1xf32>
    %126 = math.log %125 : vector<1x1xf32>
    %127 = vector.broadcast %126 : vector<1x1xf32> to vector<1x10xf32>
    %128 = arith.subf %122, %127 : vector<1x10xf32>
    %129 = vector.shape_cast %128 : vector<1x10xf32> to vector<1x1x10xf32>
    %c0_32 = arith.constant 0 : index
    %c0_33 = arith.constant 0 : index
    %c0_34 = arith.constant 0 : index
    %130 = vector.load %arg12[%c0_32, %c0_33, %c0_34] : memref<1x1x10xf32, #tpu.memory_space<vmem>>, vector<1x1x10xf32>
    tpu.vector_store %arg12[%c0_32, %c0_33, %c0_34], %129 {strides = array<i32>} : memref<1x1x10xf32, #tpu.memory_space<vmem>>, vector<1x1x10xf32>,
    return
  }
  func.func @transform_0(%arg0: i32) -> (i32, i32, i32) {
    %c0_i32 = arith.constant 0 : i32
    %c0_i32_0 = arith.constant 0 : i32
    %c0_i32_1 = arith.constant 0 : i32
    return %arg0, %c0_i32, %c0_i32_0 : i32, i32, i32
  }
  func.func @transform_1(%arg0: i32) -> (i32, i32) {
    %c0_i32 = arith.constant 0 : i32
    %c0_i32_0 = arith.constant 0 : i32
    %c0_i32_1 = arith.constant 0 : i32
    return %c0_i32, %c0_i32_0 : i32, i32
  }
  func.func @transform_2(%arg0: i32) -> (i32, i32) {
    %c0_i32 = arith.constant 0 : i32
    %c0_i32_0 = arith.constant 0 : i32
    %c0_i32_1 = arith.constant 0 : i32
    return %c0_i32, %c0_i32_0 : i32, i32
  }
  func.func @transform_3(%arg0: i32) -> (i32, i32) {
    %c0_i32 = arith.constant 0 : i32
    %c0_i32_0 = arith.constant 0 : i32
    %c0_i32_1 = arith.constant 0 : i32
    return %c0_i32, %c0_i32_0 : i32, i32
  }
  func.func @transform_4(%arg0: i32) -> (i32, i32) {
    %c0_i32 = arith.constant 0 : i32
    %c0_i32_0 = arith.constant 0 : i32
    %c0_i32_1 = arith.constant 0 : i32
    return %c0_i32, %c0_i32_0 : i32, i32
  }
  func.func @transform_5(%arg0: i32) -> (i32, i32) {
    %c0_i32 = arith.constant 0 : i32
    %c0_i32_0 = arith.constant 0 : i32
    %c0_i32_1 = arith.constant 0 : i32
    return %c0_i32, %c0_i32_0 : i32, i32
  }
  func.func @transform_6(%arg0: i32) -> (i32, i32) {
    %c0_i32 = arith.constant 0 : i32
    %c0_i32_0 = arith.constant 0 : i32
    %c0_i32_1 = arith.constant 0 : i32
    return %c0_i32, %c0_i32_0 : i32, i32
  }
  func.func @transform_7(%arg0: i32) -> (i32, i32) {
    %c0_i32 = arith.constant 0 : i32
    %c0_i32_0 = arith.constant 0 : i32
    %c0_i32_1 = arith.constant 0 : i32
    return %c0_i32, %c0_i32_0 : i32, i32
  }
  func.func @transform_8(%arg0: i32) -> (i32, i32) {
    %c0_i32 = arith.constant 0 : i32
    %c0_i32_0 = arith.constant 0 : i32
    %c0_i32_1 = arith.constant 0 : i32
    return %c0_i32, %c0_i32_0 : i32, i32
  }
  func.func @transform_9(%arg0: i32) -> (i32, i32) {
    %c0_i32 = arith.constant 0 : i32
    %c0_i32_0 = arith.constant 0 : i32
    %c0_i32_1 = arith.constant 0 : i32
    return %c0_i32, %c0_i32_0 : i32, i32
  }
  func.func @transform_10(%arg0: i32) -> (i32, i32) {
    %c0_i32 = arith.constant 0 : i32
    %c0_i32_0 = arith.constant 0 : i32
    %c0_i32_1 = arith.constant 0 : i32
    return %c0_i32, %c0_i32_0 : i32, i32
  }
  func.func @transform_11(%arg0: i32) -> (i32, i32, i32) {
    %c0_i32 = arith.constant 0 : i32
    %c0_i32_0 = arith.constant 0 : i32
    %c0_i32_1 = arith.constant 0 : i32
    return %arg0, %c0_i32, %c0_i32_0 : i32, i32, i32
  }
}

</mosaic_0001>

<bundles_post_ra>
// kernel: simple_cnn_forward.1
= control target key start
LH: loop header
LB: loop body
LE: loop exit
PB: predicated region body
PF: predicated region fallthrough
CT: control target
= control target key end

     0   :  { %s5219_s0 = inlined_call_operand.vmem [shape: bf16[2,1,788], index: 0, kind: input, shape index: {}]   ;;  %s5220_s1 = inlined_call_operand.vmem [shape: bf16[8,25], index: 1, kind: input, shape index: {}]   ;;  %s5221_s2 = inlined_call_operand.vmem [shape: f32[8,1], index: 2, kind: input, shape index: {}]   ;;  %s5222_s3 = inlined_call_operand.vmem [shape: bf16[16,200], index: 3, kind: input, shape index: {}]   ;;  %s5223_s4 = inlined_call_operand.vmem [shape: f32[16,1], index: 4, kind: input, shape index: {}]   ;;  %s5224_s5 = inlined_call_operand.vmem [shape: bf16[643,148], index: 5, kind: input, shape index: {}]   ;;  %s5225_s6 = inlined_call_operand.vmem [shape: bf16[83,16], index: 6, kind: input, shape index: {}]   ;;  %s5226_s7 = inlined_call_operand.vmem [shape: bf16[256,32], index: 7, kind: input, shape index: {}]   ;;  %s5227_s8 = inlined_call_operand.vmem [shape: f32[1,32], index: 8, kind: input, shape index: {}]   ;;  %s5228_s9 = inlined_call_operand.vmem [shape: f32[32,10], index: 9, kind: input, shape index: {}]   ;;  %s5229_s10 = inlined_call_operand.vmem [shape: f32[1,10], index: 10, kind: input, shape index: {}]   ;;  %s5230_s11 = inlined_call_operand.hbm [shape: f32[2,1,10], index: 11, kind: output, shape index: {}]  }
   0x1   :  { %5268 = sst [smem:[#allocation5_spill]] %s5219_s0 }
   0x2   :  { %5269 = sst [smem:[#allocation6_spill]] %s5220_s1 }
   0x3   :  { %5270 = sst [smem:[#allocation7_spill]] %s5221_s2 }
   0x4   :  { %16 = vsyncpa [#allocation3], 0 }
   0x5   :  { %18 = vsyncpa [#allocation3 + $0x1], 0  ;;  %s3633_s17 = smov 0   ;;  %s3635_s18 = smov 0  }
   0x6   :  { %s3637_s19 = smov 0   ;;  %s3639_s20 = smov 0  }
   0x7 LB: > { %s3654_s21 = sadd.s32 4294967295, %s3531_s20   ;;  %s2870_s22 = sadd.s32 4294967294, %s3531_s20   ;;  %s3531_s20 = sphi %s3639_s20, %s5371_s20   ;;  %s3527_s19 = sphi %s3637_s19, %s5370_s19   ;;  %s3523_s18 = sphi %s3635_s18, %s5369_s18   ;;  %s3519_s17 = sphi %s3633_s17, %s5368_s17  }
   0x8   : > { %s3658_s23 = sadd.s32 1, %s3531_s20   ;;  %s267_s24 = sadd.s32 1, %s3527_s19 }
   0x9   : > { %s264_s25 = ssub.s32 %s3531_s20, %s3658_s23  ;;  %p277_p0 = scmp.ne.s32.totalorder %s3527_s19, %s3523_s18 }
   0xa   : > { %p265_p1 = scmp.eq.s32.totalorder %s264_s25, 0  ;;  %p278_p2 = scmp.eq.s32.totalorder %s3654_s21, 1 }
   0xb   : > { %p283_p3 = scmp.ne.s32.totalorder %s3523_s18, %s3519_s17  ;;  %p284_p4 = scmp.eq.s32.totalorder %s2870_s22, 1 }
   0xc   : > { %s3669_s26 = scalar_select %p265_p1, %s3527_s19, %s267_s24  }
   0xd   : > { %p3671_p5 = por %p278_p2, %p277_p0  ;;  %p3675_p6 = por %p284_p4, %p283_p3 }
   0xe   : > { %p2873_p7 = scmp.ge.s32.totalorder %s3531_s20, 1  ;;  %p339_p8 = scmp.lt.s32.totalorder %s3531_s20, 3 }
  0x10   : > { %p340_p9 = pnand %p2873_p7, %p339_p8 }
  0x11   : > { %p377_p10 = scmp.lt.s32.totalorder (!%p340_p9), %s3654_s21, 1  ;;  %v524_v0 = vlaneseq (!%p340_p9)  ;;  %v3533_v1 = vmov (!%p340_p9), 1966171168   ;;  %s5273_s0 = sld [smem:[#allocation5_spill]] (!%p340_p9)  ;;  %vm5250_vm0 = vcmask (!%p340_p9), 1039360   ;;  %vm5249_vm1 = vcmask (!%p340_p9), 1040384  }
  0x12   : > { %343 = sbr.rel (%p340_p9) target bundleno = 3027 (0xbd3), region = 64  ;;  %v522_v2 = vunpack.c.l.s4 (!%p340_p9), %v3533_v1  ;;  %s5245_s15 = smov (!%p340_p9), 101   ;;  %vm1012_vm2 = vsmask.f32 (!%p340_p9), 256  ;;  %vm5247_vm4 = vcmask (!%p340_p9), 1022976   ;;  %vm5255_vm5 = vcmask (!%p340_p9), 1041408  }
  0x13   : > { %v525_v3 = vshrl.u32 (!%p340_p9), %v524_v0, 7  ;;  %s5233_s16 = smov (!%p340_p9), 126   ;;  %s5235_s22 = smov (!%p340_p9), 127   ;;  %vm3994_vm3 = vmand (!%p340_p9), %vm5249_vm1, %vm1012_vm2  ;;  %vm1046_vm6 = vsmask.f32 (!%p340_p9), 1280  ;;  %vm5248_vm7 = vcmask (!%p340_p9), 1031168  }
  0x14   : > { %v523_v4 = vunpack.c.0.s8 (!%p340_p9), %v522_v2  ;;  %s5243_s24 = smov (!%p340_p9), 100   ;;  %s5231_s25 = smov (!%p340_p9), 125   ;;  %vm4011_vm8 = vmand (!%p340_p9), %vm5255_vm5, %vm1046_vm6  ;;  %vm5257_vm9 = vcmask (!%p340_p9), 826368   ;;  %vm5256_vm10 = vcmask (!%p340_p9), 818176   ;;  %vm5253_vm11 = vcmask (!%p340_p9), 1042432  }
  0x15   : > { %s5237_s12 = smov (!%p340_p9), 97   ;;  %s5239_s13 = smov (!%p340_p9), 124   ;;  %vm1080_vm12 = vsmask.f32 (!%p340_p9), 2304  ;;  %vm5241_vm13 = vcmask (!%p340_p9), 809984   ;;  %vm5258_vm14 = vcmask (!%p340_p9), 1043456  }
  0x16   : > { %v3683_v5 = vsub.s32 (!%p340_p9), %v523_v4, %v525_v3  ;;  %vm1114_vm15 = vsmask.f32 (!%p340_p9), 3328  ;;  %vm4038_vm2 = vmand (!%p340_p9), %vm5253_vm11, %vm1080_vm12  ;;  %vm5254_vm6 = vcmask (!%p340_p9), 801792   ;;  %s5289_s2 = sld [smem:[#allocation7_spill]] (!%p340_p9)  ;;  %s5302_s1 = sld [smem:[#allocation6_spill]] (!%p340_p9) }
  0x17   : > { %vm4058_vm12 = vmand (!%p340_p9), %vm5258_vm14, %vm1114_vm15  ;;  %vm5282_vm15 = vcmask (!%p340_p9), 809984  }
  0x19   : > { %s378_s29 = scalar_select %p377_p10, %s3654_s21, 1 }
  0x1b   : > { %s3065_s30 = smul.u32 7, %s378_s29  ;;  %s5238_s29 = smov 99  }
  0x1d   : > { %s380_s14 = scalar_lea.vmem %s5273_s0, %s3065_s30  ;;  %s3540_s30 = smov 98  }
  0x1e   : > { %v3688_v6 = vld [vmem:[%s380_s14] sm:$0x7f]  ;;  %s5267_s14 = smov 96   ;;  %s3555_s0 = smov 115  }
  0x1f   : > { %v615_v7 = vcombine.low %v3688_v6, %v3688_v6  ;;  %v527_v8 = vrot.slane %v3688_v6, %v3683_v5  ;;  %v520_v0 = vcombine.high %v3688_v6, %v3688_v6 }
  0x21   : > { %v3695_v9 = vrot.slane %v615_v7, %v3683_v5  ;;  %v535_v10 = vcombine.high %v527_v8, %v527_v8  ;;  %v3698_v11 = vrot.slane %v527_v8, %v3683_v5  ;;  %v688_v18 = vcombine.low %v527_v8, %v527_v8 }
  0x22   : > { %v534_v4 = vrot.slane %v520_v0, %v3683_v5 }
  0x23   : > { %v3702_v12 = vrot.slane %v3695_v9, %v3683_v5  ;;  %v3705_v13 = vrot.slane %v535_v10, %v3683_v5  ;;  %1261 = vrot.lane.b32.xlu0 %v3698_v11, %s5245_s15  ;;  %v623_v14 = vcombine.high %v3695_v9, %v3695_v9  ;;  %v3713_v15 = vcombine.high %v3698_v11, %v3698_v11 }
  0x24   : > { %v3731_v21 = vshll.u32 %v3698_v11, 16  ;;  %v3745_v25 = vrot.slane %v688_v18, %v3683_v5  ;;  %v753_v42 = vcombine.low %v3695_v9, %v3695_v9  ;;  %v536_v9 = vcombine.high %v534_v4, %v534_v4 }
  0x25   : > { %640 = vrot.lane.b32.xlu1 %v3702_v12, %s5233_s16  ;;  %v3718_v16 = vshll.u32 %v3705_v13, 16  ;;  %v3722_v17 = vcombine.high %v3705_v13, %v3705_v13  ;;  %v3725_v19 = vrot.slane %v623_v14, %v3683_v5  ;;  %v3728_v20 = vshll.u32 %v3713_v15, 16 }
  0x26   : > { %v3742_v24 = vcombine.high %v3702_v12, %v3702_v12  ;;  %v3754_v27 = vcombine.high %v3745_v25, %v3745_v25  ;;  %v658_v33 = vrot.slane %v3731_v21, 7  ;;  %v723_v37 = vrot.slane %v3731_v21, 6 }
  0x27   : > { %v3734_v22 = vshll.u32 %v3722_v17, 16  ;;  %v3144_v23 = vpack.i.bf16 %v3728_v20, %v3718_v16  ;;  %v724_v28 = vrot.slane %v3718_v16, 6  ;;  %v725_v29 = vrot.slane %v3728_v20, 6 }
  0x28   : > { %v639_v30 = vcombine.high %v3725_v19, %v3725_v19  ;;  %v659_v31 = vrot.slane %v3718_v16, 7  ;;  %v660_v32 = vrot.slane %v3728_v20, 7  ;;  %v833_v35 = vrot.slane %v3718_v16, 4 }
  0x29   : > { %642 = vrot.lane.b32.xlu1 %v3725_v19, %s5233_s16  ;;  %3145 = vrot.lane.b32.xlu0 %v3144_v23, %s5235_s22  ;;  %v3149_v26 = vpack.i.bf16 %v3731_v21, %v3734_v22  ;;  %v661_v34 = vrot.slane %v3734_v22, 7  ;;  %v3159_v36 = vpack.i.bf16 %v725_v29, %v724_v28  ;;  %v834_v38 = vrot.slane %v3728_v20, 4 }
  0x2a   : > { %v832_v39 = vrot.slane %v3731_v21, 4  ;;  %v3154_v40 = vpack.i.bf16 %v660_v32, %v659_v31  ;;  %v726_v41 = vrot.slane %v3734_v22, 6  ;;  %v835_v43 = vrot.slane %v3734_v22, 4 }
  0x2b   : > { %v3776_v44 = vpack.i.bf16 %v834_v38, %v833_v35  ;;  %v883_v45 = vrot.slane %v3718_v16, 3  ;;  %v884_v46 = vrot.slane %v3728_v20, 3  ;;  %v882_v47 = vrot.slane %v3731_v21, 3 }
  0x2c   : > { %v3164_v48 = vpack.i.bf16 %v658_v33, %v661_v34  ;;  %v3781_v49 = vpack.i.bf16 %v835_v43, %v832_v39  ;;  %v885_v50 = vrot.slane %v3734_v22, 3  ;;  %v933_v51 = vrot.slane %v3718_v16, 2 }
  0x2d   : > { %644 = vrot.lane.b32.xlu1 %v3742_v24, %s5233_s16  ;;  %3150 = vrot.lane.b32.xlu0 %v3149_v26, %s5235_s22  ;;  %v3786_v52 = vpack.i.bf16 %v884_v46, %v883_v45  ;;  %v934_v53 = vrot.slane %v3728_v20, 2  ;;  %v932_v54 = vrot.slane %v3731_v21, 2  ;;  %v935_v55 = vrot.slane %v3734_v22, 2 }
  0x2e   : > { %v3792_v56 = vpack.i.bf16 %v885_v50, %v882_v47  ;;  %v982_v57 = vrot.slane %v3718_v16, 1  ;;  %v983_v58 = vrot.slane %v3728_v20, 1  ;;  %v981_v61 = vrot.slane %v3731_v21, 1 }
  0x2f   : > { %v3796_v59 = vpack.i.bf16 %v934_v53, %v933_v51  ;;  %v3798_v60 = vpack.i.bf16 %v935_v55, %v932_v54  ;;  %v984_v62 = vrot.slane %v3734_v22, 1  ;;  %v3808_v1 = vrot.slane %v753_v42, %v3683_v5 }
  0x30   : > { %v3802_v63 = vpack.i.bf16 %v983_v58, %v982_v57  ;;  %v3169_v3 = vpack.i.bf16 %v723_v37, %v726_v41  ;;  %v780_v6 = vrot.slane %v3731_v21, 5  ;;  %v783_v8 = vrot.slane %v3734_v22, 5 }
  0x31   : > { %1263 = vrot.lane.b32.xlu1 %v3754_v27, %s5245_s15  ;;  %646 = vrot.lane.b32.xlu0 %v639_v30, %s5233_s16  ;;  %v3810_v2 = vpack.i.bf16 %v984_v62, %v981_v61  ;;  %v761_v7 = vcombine.high %v3808_v1, %v3808_v1  ;;  %v781_v10 = vrot.slane %v3718_v16, 5  ;;  %v782_v14 = vrot.slane %v3728_v20, 5 }
  0x32   : > { %v3828_v18 = vrot.slane %v534_v4, %v3683_v5  ;;  %v3831_v23 = vrot.slane %v536_v9, %v3683_v5  ;;  %v3179_v21 = vpack.i.bf16 %v780_v6, %v783_v8  ;;  %v3847_v26 = vcombine.low %v3705_v13, %v3705_v13 }
  0x33   : > { %v3174_v22 = vpack.i.bf16 %v782_v14, %v781_v10  ;;  %v3862_v30 = vcombine.low %v3698_v11, %v3698_v11  ;;  %v689_v32 = vcombine.low %v534_v4, %v534_v4  ;;  %v863_v41 = vcombine.low %v3725_v19, %v3725_v19 }
  0x34   : > { %v3839_v16 = vshll.u32 %v3828_v18, 16  ;;  %v3842_v20 = vshll.u32 %v3831_v23, 16  ;;  %v813_v39 = vcombine.low %v3831_v23, %v3831_v23  ;;  %v862_v42 = vcombine.low %v3702_v12, %v3702_v12 }
  0x35   : > { %3160 = vrot.lane.b32.xlu1 %v3159_v36, %s5243_s24  ;;  %3155 = vrot.lane.b32.xlu0 %v3154_v40, %s5231_s25  ;;  %v3872_v33 = vrot.slane %v689_v32, %v3683_v5  ;;  %v3892_v40 = vcombine.low %v3828_v18, %v3828_v18  ;;  %v912_v43 = vcombine.low %v3745_v25, %v3745_v25 }
  0x36   : > { %v662_v28 = vrot.slane %v3839_v16, 7  ;;  %v663_v29 = vrot.slane %v3842_v20, 7  ;;  %v727_v34 = vrot.slane %v3839_v16, 6  ;;  %v728_v35 = vrot.slane %v3842_v20, 6 }
  0x37   : > { %v784_v36 = vrot.slane %v3839_v16, 5  ;;  %v785_v37 = vrot.slane %v3842_v20, 5  ;;  %v836_v45 = vrot.slane %v3839_v16, 4  ;;  %v886_v47 = vrot.slane %v3839_v16, 3 }
  0x38   : > { %v3189_v31 = vpack.i.bf16 %v663_v29, %v662_v28  ;;  %v3194_v38 = vpack.i.bf16 %v728_v35, %v727_v34  ;;  %v913_v50 = vcombine.low %v3872_v33, %v3872_v33  ;;  %v985_v55 = vrot.slane %v3839_v16, 1 }
  0x39   : > { %3165 = vrot.lane.b32.xlu1 %v3164_v48, %s5231_s25  ;;  %1265 = vrot.lane.b32.xlu0 %v3713_v15, %s5245_s15  ;;  %v3199_v5 = vpack.i.bf16 %v785_v37, %v784_v36 }
  0x3d   : > { %1259 = vrot.lane.b32.xlu1 %v3745_v25, %s5245_s15  ;;  %3170 = vrot.lane.b32.xlu0 %v3169_v3, %s5243_s24 }
  0x41   : > { %766 = vrot.lane.b32.xlu1 %v761_v7, %s5238_s29  ;;  %764 = vrot.lane.b32.xlu0 %v3702_v12, %s5238_s29 }
  0x45   : > { %762 = vrot.lane.b32.xlu1 %v3808_v1, %s5238_s29  ;;  %768 = vrot.lane.b32.xlu0 %v3742_v24, %s5238_s29  ;;  %v3184_v24 = vpack.i.bf16 %v3842_v20, %v3839_v16 }
  0x49   : > { %3180 = vrot.lane.b32.xlu1 %v3179_v21, %s3540_s30  ;;  %3175 = vrot.lane.b32.xlu0 %v3174_v22, %s3540_s30 }
  0x4d   : > { %818 = vrot.lane.b32.xlu1 %v3698_v11, %s5237_s12  ;;  %816 = vrot.lane.b32.xlu0 %v3847_v26, %s5237_s12 }
  0x51   : > { %3185 = vrot.lane.b32.xlu1 %v3184_v24, %s5235_s22  ;;  %820 = vrot.lane.b32.xlu0 %v3705_v13, %s5237_s12  ;;  %s3546_s22 = smov 70  }
  0x55   : > { %648 = vrot.lane.b32.xlu1 %v3698_v11, %s5233_s16  ;;  %814 = vrot.lane.b32.xlu0 %v3862_v30, %s5237_s12 }
  0x59   : > { %3190 = vrot.lane.b32.xlu1 %v3189_v31, %s5231_s25  ;;  %650 = vrot.lane.b32.xlu0 %v3705_v13, %s5233_s16  ;;  %s3544_s25 = smov 72   ;;  %s3545_s16 = smov 71  }
  0x5d   : > { %1269 = vrot.lane.b32.xlu1 %v3828_v18, %s5245_s15  ;;  %1267 = vrot.lane.b32.xlu0 %v3872_v33, %s5245_s15 }
  0x61   : > { %770 = vrot.lane.b32.xlu1 %v3745_v25, %s5238_s29  ;;  %3195 = vrot.lane.b32.xlu0 %v3194_v38, %s5243_s24 }
  0x65   : > { %3200 = vrot.lane.b32.xlu1 %v3199_v5, %s3540_s30  ;;  %772 = vrot.lane.b32.xlu0 %v3698_v11, %s5238_s29  ;;  %s3548_s29 = smov 68  }
  0x69   : > { %824 = vrot.lane.b32.xlu1 %v813_v39, %s5237_s12  ;;  %822 = vrot.lane.b32.xlu0 %v3892_v40, %s5237_s12  ;;  %s3547_s12 = smov 69  }
  0x6d   : > { %709 = vrot.lane.b32.xlu1 %v3754_v27, %s5239_s13  ;;  %707 = vrot.lane.b32.xlu0 %v3698_v11, %s5239_s13 }
  0x71   : > { %3205 = vrot.lane.b32.xlu1 %v3776_v44, %s5267_s14  ;;  %705 = vrot.lane.b32.xlu0 %v3745_v25, %s5239_s13  ;;  %v962_v44 = vcombine.low %v3808_v1, %v3808_v1 }
  0x75   : > { %866 = vrot.lane.b32.xlu1 %v863_v41, %s3544_s25  ;;  %3210 = vrot.lane.b32.xlu0 %v3781_v49, %s5267_s14 }
  0x79   : > { %864 = vrot.lane.b32.xlu1 %v862_v42, %s3544_s25  ;;  %868 = vrot.lane.b32.xlu0 %v3702_v12, %s3544_s25 }
  0x7d   : > { %711 = vrot.lane.b32.xlu1 %v3713_v15, %s5239_s13  ;;  %3215 = vrot.lane.b32.xlu0 %v3786_v52, %s3545_s16 }
  0x81   : > { %3220 = vrot.lane.b32.xlu1 %v3792_v56, %s3545_s16  ;;  %713 = vrot.lane.b32.xlu0 %v3872_v33, %s5239_s13  ;;  %s5242_s13 = smov 44  }
  0x85   : > { %918 = vrot.lane.b32.xlu1 %v3745_v25, %s3546_s22  ;;  %916 = vrot.lane.b32.xlu0 %v3862_v30, %s3546_s22 }
  0x89   : > { %3225 = vrot.lane.b32.xlu1 %v3796_v59, %s3547_s12  ;;  %914 = vrot.lane.b32.xlu0 %v912_v43, %s3546_s22 }
  0x8d   : > { %965 = vrot.lane.b32.xlu1 %v862_v42, %s3548_s29  ;;  %3230 = vrot.lane.b32.xlu0 %v3798_v60, %s3547_s12 }
  0x91   : > { %963 = vrot.lane.b32.xlu1 %v962_v44, %s3548_s29  ;;  %967 = vrot.lane.b32.xlu0 %v3808_v1, %s3548_s29 }
  0x95   : > { %3240 = vrot.lane.b32.xlu1 %v3810_v2, %s5242_s13  ;;  %3235 = vrot.lane.b32.xlu0 %v3802_v63, %s5242_s13  ;;  %v3944_v25 = vpop.permute.xlu0 %1261 }
  0x97   : > { %v3947_v46 = vpop.permute.xlu1 %640 }
  0x99   : > { %870 = vrot.lane.b32.xlu1 %v3725_v19, %s3544_s25  ;;  %846 = vrot.lane.b32.xlu0 %v836_v45, %s5267_s14  ;;  %v936_v19 = vrot.slane %v3839_v16, 2 }
  0x9b   : > { %v3953_v48 = vpop.permute.xlu1 %642  ;;  %v3955_v49 = vpop.permute.xlu0 %3145 }
  0x9c   : > { %v3148_v60 = vunpack.i.h.bf16 %v3955_v49  ;;  %v3147_v61 = vunpack.i.l.bf16 %v3955_v49 }
  0x9d   : > { %896 = vrot.lane.b32.xlu1 %v886_v47, %s3545_s16  ;;  %872 = vrot.lane.b32.xlu0 %v3862_v30, %s3544_s25 }
  0x9e   : > { %v605_v63 = vsel %vm5250_vm0, %v3147_v61, %v3148_v60 }
  0x9f   : > { %v3962_v51 = vpop.permute.xlu1 %644  ;;  %v3964_v52 = vpop.permute.xlu0 %3150  ;;  %v1015_v7 = vsel %vm3994_vm3, %v3705_v13, %v605_v63 }
  0xa0   : > { %v654_v4 = vsel %vm5248_vm7, %v3953_v48, %v3962_v51  ;;  %v3153_v10 = vunpack.i.h.bf16 %v3964_v52  ;;  %v3152_v28 = vunpack.i.l.bf16 %v3964_v52 }
  0xa1   : > { %920 = vrot.lane.b32.xlu1 %v3698_v11, %s3546_s22  ;;  %922 = vrot.lane.b32.xlu0 %v913_v50, %s3546_s22  ;;  %v1027_v14 = vsel %vm5249_vm1, %v1015_v7, %v654_v4 }
  0xa2   : > { %v604_v29 = vsel %vm5250_vm0, %v3153_v10, %v3147_v61  ;;  %v606_v41 = vsel %vm5250_vm0, %v3148_v60, %v3152_v28 }
  0xa3   : > { %v3970_v53 = vpop.permute.xlu1 %1263  ;;  %v3972_v54 = vpop.permute.xlu0 %646  ;;  %v1014_v39 = vsel %vm3994_vm3, %v3698_v11, %v604_v29  ;;  %v653_v11 = vsel %vm5248_vm7, %v3947_v46, %v3953_v48 }
  0xa4   : > { %v1275_v31 = vsel %vm5257_vm9, %v3944_v25, %v3970_v53  ;;  %v1023_v61 = vsel %vm5249_vm1, %v1014_v39, %v653_v11  ;;  %v655_v48 = vsel %vm5248_vm7, %v3962_v51, %v3972_v54 }
  0xa5   : > { %946 = vrot.lane.b32.xlu1 %v936_v19, %s3547_s12  ;;  %969 = vrot.lane.b32.xlu0 %v3702_v12, %s3548_s29 }
  0xa7   : > { %v3978_v56 = vpop.permute.xlu1 %3160  ;;  %v3980_v57 = vpop.permute.xlu0 %3155 }
  0xa8   : > { %v3158_v1 = vunpack.i.h.bf16 %v3980_v57  ;;  %v3157_v2 = vunpack.i.l.bf16 %v3980_v57  ;;  %v3163_v21 = vunpack.i.h.bf16 %v3978_v56  ;;  %v3162_v22 = vunpack.i.l.bf16 %v3978_v56 }
  0xa9   : > { %971 = vrot.lane.b32.xlu1 %v912_v43, %s3548_s29  ;;  %995 = vrot.lane.b32.xlu0 %v985_v55, %s5242_s13  ;;  %v1016_v57 = vsel %vm3994_vm3, %v3713_v15, %v606_v41  ;;  %s5246_s13 = smov 43  }
  0xaa   : > { %v678_v9 = vsel %vm5247_vm4, %v3157_v2, %v3158_v1  ;;  %v4035_v34 = vsel %vm5256_vm10, %v3162_v22, %v3163_v21 }
  0xab   : > { %v3984_v58 = vpop.permute.xlu1 %3165  ;;  %v3986_v59 = vpop.permute.xlu0 %1265  ;;  %v4022_v13 = vsel %vm4011_vm8, %v1027_v14, %v678_v9 }
  0xac   : > { %v3168_v32 = vunpack.i.h.bf16 %v3984_v58  ;;  %v1304_v36 = vsel %vm5255_vm5, %v4022_v13, %v1275_v31  ;;  %v3167_v47 = vunpack.i.l.bf16 %v3984_v58  ;;  %v1276_v41 = vsel %vm5257_vm9, %v3970_v53, %v3986_v59 }
  0xad   : > { %v1319_v49 = vsel %vm4038_vm2, %v1304_v36, %v4035_v34 }
  0xae   : > { %v677_v45 = vsel %vm5247_vm4, %v3168_v32, %v3157_v2  ;;  %v679_v7 = vsel %vm5247_vm4, %v3158_v1, %v3167_v47 }
  0xaf   : > { %v1260_v12 = vpop.permute.xlu1 %1259  ;;  %v3990_v62 = vpop.permute.xlu0 %3170  ;;  %v4088_v2 = vsel %vm4011_vm8, %v1023_v61, %v677_v45 }
  0xb0   : > { %v3173_v60 = vunpack.i.h.bf16 %v3990_v62  ;;  %v1274_v15 = vsel %vm5257_vm9, %v1260_v12, %v3944_v25  ;;  %v3172_v51 = vunpack.i.l.bf16 %v3990_v62  ;;  %v1031_v25 = vsel %vm5249_vm1, %v1016_v57, %v655_v48 }
  0xb1   : > { %v1301_v29 = vsel %vm5255_vm5, %v4088_v2, %v1274_v15  ;;  %v4113_v32 = vsel %vm4011_vm8, %v1031_v25, %v679_v7 }
  0xb2   : > { %v4105_v12 = vsel %vm5256_vm10, %v3173_v60, %v3162_v22  ;;  %v1307_v53 = vsel %vm5255_vm5, %v4113_v32, %v1276_v41 }
  0xb3   : > { %v4000_v3 = vpop.permute.xlu1 %766  ;;  %v4008_v6 = vpop.permute.xlu0 %764 }
  0xb4   : > { %v4049_v38 = vsel %vm5241_vm13, %v4008_v6, %v4000_v3  ;;  %vm5251_vm13 = vcmask 793600  }
  0xb5   : > { %v1328_v50 = vsel %vm5253_vm11, %v1319_v49, %v4049_v38  ;;  %v3551_v49 = vmov 0  }
  0xb6   : > { %1447 = vmatprep.mubr.bf16.mxu0 %v3551_v49  ;;  %3244 = vset.pattern.permute.xlu1 %v3551_v49 }
  0xb7   : > { %v763_v16 = vpop.permute.xlu1 %762  ;;  %v4024_v24 = vpop.permute.xlu0 %768  ;;  %3270 = vset.pattern.permute.xlu0 %v3551_v49 }
  0xb8   : > { %v4117_v36 = vsel %vm5282_vm15, %v763_v16, %v4008_v6  ;;  %v4134_v6 = vsel %vm5256_vm10, %v3163_v21, %v3172_v51  ;;  %v1318_v16 = vsel %vm4038_vm2, %v1301_v29, %v4105_v12 }
  0xb9   : > { %v1325_v45 = vsel %vm5253_vm11, %v1318_v16, %v4117_v36  ;;  %v1320_v57 = vsel %vm4038_vm2, %v1307_v53, %v4134_v6 }
  0xbb   : > { %v4044_v37 = vpop.permute.xlu1 %3180  ;;  %v3176_v5 = vpop.permute.xlu0 %3175 }
  0xbc   : > { %v3178_v42 = vunpack.i.h.bf16 %v3176_v5  ;;  %v3177_v43 = vunpack.i.l.bf16 %v3176_v5  ;;  %v3183_v9 = vunpack.i.h.bf16 %v4044_v37  ;;  %v3182_v5 = vunpack.i.l.bf16 %v4044_v37 }
  0xbe   : > { %v4073_v55 = vsel %vm5254_vm6, %v3177_v43, %v3178_v42  ;;  %v4121_v39 = vsel %vm5254_vm6, %v3183_v9, %v3177_v43 }
  0xbf   : > { %v819_v19 = vpop.permute.xlu1 %818  ;;  %v817_v63 = vpop.permute.xlu0 %816  ;;  %v1344_v46 = vsel %vm4058_vm12, %v1328_v50, %v4073_v55  ;;  %v4159_v50 = vsel %vm5254_vm6, %v3178_v42, %v3182_v5 }
  0xc0   : > { %v4093_v4 = vsel %vm5251_vm13, %v817_v63, %v819_v19 }
  0xc1   : > { %v1352_v10 = vsel %vm5258_vm14, %v1344_v46, %v4093_v4 }
  0xc2   : > { %1370 = vrot.lane.b32.xlu1 %v1352_v10, %s5246_s13 }
  0xc3   : > { %v3186_v14 = vpop.permute.xlu1 %3185  ;;  %v4109_v1 = vpop.permute.xlu0 %820 }
  0xc4   : > { %v3188_v31 = vunpack.i.h.bf16 %v3186_v14  ;;  %v3187_v21 = vunpack.i.l.bf16 %v3186_v14 }
  0xc6   : > { %v1019_v22 = vsel %vm3994_vm3, %v3831_v23, %v3188_v31  ;;  %v4142_v23 = vsel %vm5282_vm15, %v4000_v3, %v4024_v24  ;;  %v1343_v3 = vsel %vm4058_vm12, %v1325_v45, %v4121_v39  ;;  %v607_v7 = vsel %vm5250_vm0, %v3152_v28, %v3187_v21 }
  0xc7   : > { %v649_v43 = vpop.permute.xlu1 %648  ;;  %v815_v56 = vpop.permute.xlu0 %814  ;;  %v1331_v61 = vsel %vm5253_vm11, %v1320_v57, %v4142_v23  ;;  %v608_v9 = vsel %vm5250_vm0, %v3187_v21, %v3188_v31  ;;  %v1017_v28 = vsel %vm3994_vm3, %v3722_v17, %v607_v7  ;;  %v1280_v57 = vcombine.high %v3828_v18, %v3828_v18 }
  0xc8   : > { %v4151_v11 = vsel %vm5251_vm13, %v815_v56, %v817_v63  ;;  %v4171_v63 = vsel %vm5251_vm13, %v819_v19, %v4109_v1  ;;  %v1345_v15 = vsel %vm4058_vm12, %v1331_v61, %v4159_v50  ;;  %v656_v52 = vsel %vm5248_vm7, %v3972_v54, %v649_v43 }
  0xc9   : > { %v1350_v60 = vsel %vm5258_vm14, %v1343_v3, %v4151_v11  ;;  %v1354_v25 = vsel %vm5258_vm14, %v1345_v15, %v4171_v63  ;;  %v1018_v31 = vsel %vm3994_vm3, %v3828_v18, %v608_v9  ;;  %v1035_v56 = vsel %vm5249_vm1, %v1017_v28, %v656_v52  ;;  %vm5283_vm3 = vmmov %vm5282_vm15 }
  0xca   : > { %1368 = vrot.lane.b32.xlu0 %v1350_v60, %s5246_s13  ;;  %vm5252_vm15 = vcmask 1014784   ;;  %vm1181_vm0 = vcmask 1045504  }
  0xcb   : > { %v3191_v42 = vpop.permute.xlu1 %3190  ;;  %v651_v46 = vpop.permute.xlu0 %650 }
  0xcc   : > { %v3193_v48 = vunpack.i.h.bf16 %v3191_v42  ;;  %v1043_v10 = vsel %vm5249_vm1, %v1019_v22, %v651_v46  ;;  %v3192_v14 = vunpack.i.l.bf16 %v3191_v42  ;;  %v657_v19 = vsel %vm5248_vm7, %v649_v43, %v651_v46 }
  0xcd   : > { %v1039_v16 = vsel %vm5249_vm1, %v1018_v31, %v657_v19  ;;  %v1282_v31 = vshll.u32 %v1280_v57, 16  ;;  %vm1148_vm7 = vsmask.f32 4352  ;;  %vm900_vm1 = vcmask 580608  }
  0xce   : > { %v4187_v29 = vsel %vm4011_vm8, %v1043_v10, %v3193_v48  ;;  %1372 = vrot.lane.b32.xlu0 %v1354_v25, %s5246_s13  ;;  %v680_v53 = vsel %vm5247_vm4, %v3167_v47, %v3192_v14  ;;  %v681_v45 = vsel %vm5247_vm4, %v3192_v14, %v3193_v48  ;;  %vm5259_vm4 = vcmask 588800  }
  0xcf   : > { %v4190_v41 = vpop.permute.xlu1 %1269  ;;  %v1268_v22 = vpop.permute.xlu0 %1267  ;;  %v4208_v43 = vsel %vm4011_vm8, %v1035_v56, %v680_v53  ;;  %v4214_v0 = vsel %vm4011_vm8, %v1039_v16, %v681_v45  ;;  %vm5284_vm8 = vmmov %vm5283_vm3  ;;  %v1284_v56 = vrot.slane %v1282_v31, 6  ;;  %v1292_v57 = vrot.slane %v1282_v31, 5 }
  0xd0   : > { %v1277_v17 = vsel %vm5257_vm9, %v3986_v59, %v1268_v22  ;;  %v1278_v58 = vsel %vm5257_vm9, %v1268_v22, %v4190_v41  ;;  %v937_v31 = vrot.slane %v3842_v20, 2  ;;  %vm5266_vm9 = vcmask 556032  }
  0xd1   : > { %v1310_v60 = vsel %vm5255_vm5, %v4208_v43, %v1277_v17  ;;  %v1313_v59 = vsel %vm5255_vm5, %v4214_v0, %v1278_v58 }
  0xd3   : > { %v771_v54 = vpop.permute.xlu1 %770  ;;  %v3196_v47 = vpop.permute.xlu0 %3195 }
  0xd4   : > { %v4218_v21 = vunpack.i.h.bf16 %v3196_v47  ;;  %v3197_v3 = vunpack.i.l.bf16 %v3196_v47 }
  0xd6   : > { %v4229_v8 = vsel %vm5256_vm10, %v3172_v51, %v3197_v3  ;;  %v4233_v61 = vsel %vm5256_vm10, %v3197_v3, %v4218_v21  ;;  %v4247_v51 = vsel %vm5283_vm3, %v4024_v24, %v771_v54  ;;  %vm850_vm3 = vcmask 785408  }
  0xd7   : > { %v3201_v42 = vpop.permute.xlu1 %3200  ;;  %v1321_v46 = vsel %vm4038_vm2, %v1310_v60, %v4229_v8  ;;  %v4238_v48 = vpop.permute.xlu0 %772  ;;  %v1322_v62 = vsel %vm4038_vm2, %v1313_v59, %v4233_v61  ;;  %vm1216_vm10 = vsmask.f32 6400 }
  0xd8   : > { %v4240_v15 = vunpack.i.h.bf16 %v3201_v42  ;;  %v3202_v7 = vunpack.i.l.bf16 %v3201_v42  ;;  %v4251_v9 = vsel %vm5284_vm8, %v771_v54, %v4238_v48  ;;  %v1334_v10 = vsel %vm5253_vm11, %v1321_v46, %v4247_v51 }
  0xd9   : > { %v1337_v19 = vsel %vm5253_vm11, %v1322_v62, %v4251_v9  ;;  %v1258_v54 = vcombine.high %v3872_v33, %v3872_v33  ;;  %v887_v46 = vrot.slane %v3842_v20, 3  ;;  %vm5260_vm8 = vcmask 1044480  }
  0xda   : > { %v4257_v14 = vsel %vm5254_vm6, %v3202_v7, %v4240_v15  ;;  %v4264_v25 = vsel %vm5254_vm6, %v3182_v5, %v3202_v7  ;;  %vm5261_vm6 = vcmask 564224  }
  0xdb   : > { %v4266_v24 = vpop.permute.xlu1 %824  ;;  %v1347_v52 = vsel %vm4058_vm12, %v1337_v19, %v4257_v14  ;;  %v1346_v28 = vsel %vm4058_vm12, %v1334_v10, %v4264_v25  ;;  %v823_v22 = vpop.permute.xlu0 %822 }
  0xdc   : > { %v830_v16 = vsel %vm5251_vm13, %v4109_v1, %v823_v22  ;;  %v4278_v37 = vsel %vm5251_vm13, %v823_v22, %v4266_v24  ;;  %vm926_vm13 = vcmask 572416  }
  0xdd   : > { %v1358_v5 = vsel %vm5258_vm14, %v1347_v52, %v4278_v37  ;;  %v1356_v53 = vsel %vm5258_vm14, %v1346_v28, %v830_v16 }
  0xde   : > { %1376 = vrot.lane.b32.xlu0 %v1358_v5, %s5246_s13  ;;  %1374 = vrot.lane.b32.xlu1 %v1356_v53, %s5246_s13  ;;  %s5287_s13 = smov 97  }
  0xdf   : > { %v710_v45 = vpop.permute.xlu1 %709  ;;  %v708_v1 = vpop.permute.xlu0 %707 }
  0xe0   : > { %v719_v17 = vsel %vm5252_vm15, %v708_v1, %v710_v45 }
  0xe1   : > { %v1061_v58 = vsel %vm5255_vm5, %v4022_v13, %v719_v17 }
  0xe2   : > { %v1083_v47 = vsel %vm4038_vm2, %v1061_v58, %v4035_v34  ;;  %1285 = vrot.lane.b32.xlu0 %v1284_v56, %s5243_s24  ;;  %1271 = vrot.lane.b32.xlu1 %v1258_v54, %s5245_s15  ;;  %s5285_s24 = smov 99   ;;  %s5286_s15 = smov 124  }
  0xe3   : > { %v4295_v3 = vpop.permute.xlu1 %3205  ;;  %v1095_v33 = vsel %vm5253_vm11, %v1083_v47, %v4049_v38  ;;  %v706_v60 = vpop.permute.xlu0 %705 }
  0xe4   : > { %v1117_v59 = vsel %vm4058_vm12, %v1095_v33, %v4073_v55  ;;  %v837_v55 = vrot.slane %v3842_v20, 4  ;;  %v718_v7 = vsel %vm5252_vm15, %v706_v60, %v708_v1 }
  0xe5   : > { %v4304_v13 = vsel %vm5258_vm14, %v1117_v59, %v4093_v4 }
  0xe6   : > { %1293 = vrot.lane.b32.xlu0 %v1292_v57, %s3540_s30  ;;  %1289 = vrot.lane.b32.xlu1 %v3754_v27, %s5285_s24  ;;  %s5315_s30 = smov 43   ;;  %s3560_s24 = smov 103  }
  0xe7   : > { %v4309_v34 = vpop.permute.xlu1 %866  ;;  %v4311_v42 = vpop.permute.xlu0 %3210 }
  0xea   : > { %715 = vrot.lane.b32.xlu0 %v3828_v18, %s5286_s15  ;;  %1297 = vrot.lane.b32.xlu1 %v3828_v18, %s5287_s13  ;;  %s3557_s13 = smov 113  }
  0xeb   : > { %v4317_v38 = vpop.permute.xlu1 %864  ;;  %v4320_v4 = vpop.permute.xlu0 %868 }
  0xec   : > { %v877_v60 = vsel %vm5259_vm4, %v4317_v38, %v4309_v34 }
  0xee   : > { %874 = vrot.lane.b32.xlu0 %v3847_v26, %s3544_s25  ;;  %848 = vrot.lane.b32.xlu1 %v837_v55, %s5267_s14  ;;  %v1057_v26 = vsel %vm5255_vm5, %v4088_v2, %v718_v7  ;;  %v878_v55 = vsel %vm5259_vm4, %v4309_v34, %v4320_v4  ;;  %vm1250_vm4 = vsmask.f32 7424  ;;  %v3213_v34 = vunpack.i.h.bf16 %v4311_v42  ;;  %s5333_s25 = smov 100   ;;  %s5344_s14 = smov 125  }
  0xef   : > { %v712_v27 = vpop.permute.xlu1 %711  ;;  %v4327_v62 = vpop.permute.xlu0 %3215 }
  0xf0   : > { %v720_v18 = vsel %vm5252_vm15, %v710_v45, %v712_v27  ;;  %v3218_v58 = vunpack.i.h.bf16 %v4327_v62  ;;  %v3217_v47 = vunpack.i.l.bf16 %v4327_v62 }
  0xf1   : > { %v1065_v10 = vsel %vm5255_vm5, %v4113_v32, %v720_v18 }
  0xf2   : > { %v1084_v19 = vsel %vm4038_vm2, %v1065_v10, %v4134_v6  ;;  %924 = vrot.lane.b32.xlu0 %v3892_v40, %s3546_s22  ;;  %898 = vrot.lane.b32.xlu1 %v887_v46, %s3545_s16  ;;  %v1082_v40 = vsel %vm4038_vm2, %v1057_v26, %v4105_v12  ;;  %s5288_s16 = smov 44   ;;  %v902_v18 = vsel %vm900_vm1, %v3217_v47, %v3218_v58  ;;  %s3559_s22 = smov 104  }
  0xf3   : > { %v1099_v52 = vsel %vm5253_vm11, %v1084_v19, %v4142_v23  ;;  %v4342_v28 = vpop.permute.xlu1 %3220  ;;  %v4345_v32 = vpop.permute.xlu0 %713 }
  0xf4   : > { %v1118_v6 = vsel %vm4058_vm12, %v1099_v52, %v4159_v50  ;;  %v721_v2 = vsel %vm5252_vm15, %v712_v27, %v4345_v32  ;;  %vm1182_vm15 = vsmask.f32 5376 }
  0xf5   : > { %v4354_v23 = vsel %vm5258_vm14, %v1118_v6, %v4171_v63  ;;  %v1069_v22 = vsel %vm5255_vm5, %v4208_v43, %v721_v2  ;;  %v986_v63 = vrot.slane %v3842_v20, 1  ;;  %v1091_v43 = vsel %vm5253_vm11, %v1082_v40, %v4117_v36  ;;  %v384_v36 = vld [vmem:[%s5289_s2] sm:$0xff]  ;;  %s3553_s2 = smov 117  }
  0xf6   : > { %v1085_v5 = vsel %vm4038_vm2, %v1069_v22, %v4229_v8  ;;  %973 = vrot.lane.b32.xlu0 %v3862_v30, %s3548_s29  ;;  %948 = vrot.lane.b32.xlu1 %v937_v31, %s3547_s12  ;;  %v3212_v30 = vunpack.i.l.bf16 %v4311_v42  ;;  %v1116_v20 = vsel %vm4058_vm12, %v1091_v43, %v4121_v39  ;;  %v3222_v39 = vunpack.i.l.bf16 %v4342_v28  ;;  %s5329_s12 = smov 127   ;;  %s5343_s29 = smov 126  }
  0xf7   : > { %v4367_v50 = vpop.permute.xlu1 %918  ;;  %v1103_v53 = vsel %vm5253_vm11, %v1085_v5, %v4247_v51  ;;  %v917_v12 = vpop.permute.xlu0 %916  ;;  %v1125_v1 = vsel %vm5258_vm14, %v1116_v20, %v4151_v11  ;;  %vm4401_vm11 = vmand %vm5260_vm8, %vm1148_vm7  ;;  %vm5263_vm5 = vcmask 1046528   ;;  %v3223_v2 = vunpack.i.h.bf16 %v4342_v28 }
  0xf8   : > { %v1119_v8 = vsel %vm4058_vm12, %v1103_v53, %v4264_v25  ;;  %v3207_v25 = vunpack.i.l.bf16 %v4295_v3  ;;  %v901_v27 = vsel %vm900_vm1, %v3222_v39, %v3217_v47  ;;  %vm4421_vm7 = vmand %vm1181_vm0, %vm1182_vm15  ;;  %v928_v40 = vsel %vm926_vm13, %v917_v12, %v4367_v50 }
  0xf9   : > { %v4378_v45 = vsel %vm5258_vm14, %v1119_v8, %v830_v16  ;;  %v3208_v16 = vunpack.i.h.bf16 %v4295_v3  ;;  %vm1249_vm14 = vcmask 1047552   ;;  %vm5262_vm15 = vcmask 359424  }
  0xfa   : > { %997 = vrot.lane.b32.xlu1 %v986_v63, %s5288_s16  ;;  %v851_v54 = vsel %vm850_vm3, %v3212_v30, %v3207_v25  ;;  %s3558_s16 = smov 112  }
  0xfb   : > { %v4382_v56 = vpop.permute.xlu1 %3225  ;;  %v915_v51 = vpop.permute.xlu0 %914  ;;  %v852_v33 = vsel %vm850_vm3, %v3207_v25, %v3208_v16  ;;  %v1150_v59 = vsel %vm4401_vm11, %v1125_v1, %v851_v54  ;;  %v903_v54 = vsel %vm900_vm1, %v3218_v58, %v3223_v2 }
  0xfc   : > { %v3228_v46 = vunpack.i.h.bf16 %v4382_v56  ;;  %v3227_v7 = vunpack.i.l.bf16 %v4382_v56  ;;  %v927_v10 = vsel %vm926_vm13, %v915_v51, %v917_v12  ;;  %v1151_v26 = vsel %vm4401_vm11, %v4304_v13, %v852_v33 }
  0xfd   : > { %v1159_v52 = vsel %vm5260_vm8, %v1150_v59, %v877_v60  ;;  %v1163_v6 = vsel %vm5260_vm8, %v1151_v26, %v878_v55  ;;  %vm4448_vm8 = vmand %vm5263_vm5, %vm1216_vm10  ;;  %v853_v56 = vsel %vm850_vm3, %v3208_v16, %v3213_v34 }
  0xfe   : > { %1388 = vperm.xlu1 %3244, %v384_v36   ;;  %v1184_v22 = vsel %vm4421_vm7, %v1159_v52, %v901_v27  ;;  %v1185_v42 = vsel %vm4421_vm7, %v1163_v6, %v902_v18  ;;  %v952_v13 = vsel %vm5261_vm6, %v3227_v7, %v3228_v46  ;;  %vm4466_vm10 = vmand %vm1249_vm14, %vm1250_vm4  ;;  %vm5298_vm4 = vcmask 588800  }
  0xff   : > { %v966_v17 = vpop.permute.xlu1 %965  ;;  %v4398_v3 = vpop.permute.xlu0 %3230  ;;  %v1193_v5 = vsel %vm1181_vm0, %v1184_v22, %v927_v10  ;;  %v1197_v20 = vsel %vm1181_vm0, %v1185_v42, %v928_v40  ;;  %v1152_v58 = vsel %vm4401_vm11, %v4354_v23, %v853_v56  ;;  %vm5299_vm14 = vcmask 1044480  }
 0x100   : > { %v3232_v11 = vunpack.i.l.bf16 %v4398_v3  ;;  %v1219_v1 = vsel %vm4448_vm8, %v1197_v20, %v952_v13 }
 0x102   : > { %v951_v31 = vsel %vm5261_vm6, %v3232_v11, %v3227_v7 }
 0x103   : > { %v964_v62 = vpop.permute.xlu1 %963  ;;  %v4426_v19 = vpop.permute.xlu0 %967  ;;  %v1218_v30 = vsel %vm4448_vm8, %v1193_v5, %v951_v31 }
 0x104   : > { %v977_v53 = vsel %vm5266_vm9, %v966_v17, %v4426_v19  ;;  %v976_v12 = vsel %vm5266_vm9, %v964_v62, %v966_v17  ;;  %v3233_v62 = vunpack.i.h.bf16 %v4398_v3 }
 0x105   : > { %v1231_v17 = vsel %vm5263_vm5, %v1219_v1, %v977_v53  ;;  %v1227_v11 = vsel %vm5263_vm5, %v1218_v30, %v976_v12 }
 0x106   : > { %v953_v31 = vsel %vm5261_vm6, %v3228_v46, %v3233_v62 }
 0x107   : > { %v4444_v63 = vpop.permute.xlu1 %3240  ;;  %v4455_v43 = vpop.permute.xlu0 %3235 }
 0x108   : > { %v3242_v8 = vunpack.i.l.bf16 %v4444_v63  ;;  %v3238_v51 = vunpack.i.h.bf16 %v4455_v43  ;;  %v3237_v36 = vunpack.i.l.bf16 %v4455_v43 }
 0x10a   : > { %v1001_v16 = vsel %vm5262_vm15, %v3237_v36, %v3238_v51  ;;  %v1000_v47 = vsel %vm5262_vm15, %v3242_v8, %v3237_v36  ;;  %v3552_v36 = vmov 65535  }
 0x10b   : > { %v871_v39 = vpop.permute.xlu1 %870  ;;  %v4479_v33 = vpop.permute.xlu0 %846  ;;  %v1253_v59 = vsel %vm4466_vm10, %v1231_v17, %v1001_v16  ;;  %v1252_v55 = vsel %vm4466_vm10, %v1227_v11, %v1000_v47 }
 0x10c   : > { %v879_v60 = vsel %vm5298_vm4, %v4320_v4, %v871_v39  ;;  %1415 = vmatprep.subr.bf16.mxu0 %v1253_v59  ;;  %v854_v7 = vsel %vm850_vm3, %v3213_v34, %v4479_v33 }
 0x10d   : > { %v1167_v27 = vsel %vm5299_vm14, %v1152_v58, %v879_v60  ;;  %1416 = vmatpush1.bf16.msra.mxu0 %v1252_v55  ;;  %v1153_v26 = vsel %vm4401_vm11, %v4378_v45, %v854_v7 }
 0x10e   : > { %v1186_v4 = vsel %vm4421_vm7, %v1167_v27, %v903_v54  ;;  %v4554_v27 = vld [vmem:[%s5302_s1] sm:$0xf]  ;;  %s3556_s1 = smov 116  }
 0x10f   : > { %v4496_v18 = vpop.permute.xlu1 %896  ;;  %v4498_v23 = vpop.permute.xlu0 %872 }
 0x110   : > { %v904_v10 = vsel %vm900_vm1, %v3223_v2, %v4496_v18  ;;  %v880_v34 = vsel %vm5298_vm4, %v871_v39, %v4498_v23  ;;  %vm5264_vm4 = vcmask 351232  }
 0x111   : > { %v1171_v52 = vsel %vm5299_vm14, %v1153_v26, %v880_v34  ;;  %vm5300_vm14 = vcmask 1043456  }
 0x112   : > { %v1187_v3 = vsel %vm4421_vm7, %v1171_v52, %v904_v10  ;;  %v1395_v54 = vsel %vm5300_vm14, 4294967295, %v3552_v36  ;;  %vm5303_vm14 = vcmask 826368  }
 0x113   : > { %v921_v6 = vpop.permute.xlu1 %920  ;;  %v4511_v40 = vpop.permute.xlu0 %922 }
 0x114   : > { %v929_v2 = vsel %vm926_vm13, %v4367_v50, %v921_v6  ;;  %v930_v22 = vsel %vm926_vm13, %v921_v6, %v4511_v40 }
 0x115   : > { %v1201_v45 = vsel %vm1181_vm0, %v1186_v4, %v929_v2  ;;  %v1205_v46 = vsel %vm1181_vm0, %v1187_v3, %v930_v22 }
 0x116   : > { %v1220_v42 = vsel %vm4448_vm8, %v1201_v45, %v953_v31 }
 0x117   : > { %v4520_v5 = vpop.permute.xlu1 %946  ;;  %v970_v13 = vpop.permute.xlu0 %969 }
 0x118   : > { %v954_v53 = vsel %vm5261_vm6, %v3233_v62, %v4520_v5  ;;  %v978_v12 = vsel %vm5266_vm9, %v4426_v19, %v970_v13  ;;  %v3243_v19 = vunpack.i.h.bf16 %v4444_v63  ;;  %vm5301_vm6 = vcmask 1044480  }
 0x119   : > { %v1221_v50 = vsel %vm4448_vm8, %v1205_v46, %v954_v53  ;;  %v1235_v8 = vsel %vm5263_vm5, %v1220_v42, %v978_v12  ;;  %v4540_v16 = vsel %vm5301_vm6, %v1395_v54, 0  ;;  %vm5265_vm6 = vcmask 203776  }
 0x11a   : > { %v1002_v7 = vsel %vm5262_vm15, %v3238_v51, %v3243_v19 }
 0x11b   : > { %v4530_v30 = vpop.permute.xlu0 %995  ;;  %v4532_v56 = vpop.permute.xlu1 %971  ;;  %v1254_v4 = vsel %vm4466_vm10, %v1235_v8, %v1002_v7 }
 0x11c   : > { %v979_v1 = vsel %vm5266_vm9, %v970_v13, %v4532_v56  ;;  %v1003_v60 = vsel %vm5262_vm15, %v3243_v19, %v4530_v30  ;;  %vm5304_vm15 = vcmask 818176   ;;  %vm5311_vm9 = vcmask 793600  }
 0x11d   : > { %v1239_v59 = vsel %vm5263_vm5, %v1221_v50, %v979_v1  ;;  %vm5305_vm5 = vcmask 1041408  }
 0x11e   : > { %v1255_v63 = vsel %vm4466_vm10, %v1239_v59, %v1003_v60 }
 0x134   : > { %v1371_v39 = vpop.permute.xlu1 %1370 }
 0x13c   : > { %v1369_v20 = vpop.permute.xlu0 %1368 }
 0x13d   : > { %v1381_v17 = vsel %vm5264_vm4, %v1369_v20, %v1371_v39 }
 0x13e   : > { %v1398_v55 = vand.u32 %v4540_v16, %v1381_v17 }
 0x140   : > { %v1373_v47 = vpop.permute.xlu0 %1372 }
 0x141   : > { %v1382_v11 = vsel %vm5264_vm4, %v1371_v39, %v1373_v47 }
 0x142   : > { %v1401_v58 = vand.u32 %v4540_v16, %v1382_v11 }
 0x144   : > { %1417 = vmatprep.subr.bf16.mxu0 %v1401_v58 }
 0x145   : > { %1418 = vmatpush1.bf16.msra.mxu0 %v1398_v55 }
 0x146   : > { %1456 = vmatprep.subr.bf16.mxu0 %v1255_v63 }
 0x148   : > { %2874 = vmatmul.mubr.msk.bf16.vlgmr.msra.gmra.mrb[0].mxu0 %vm5265_vm6, %v4554_v27 }
 0x149   : > { %1457 = vmatpush1.bf16.msra.mxu0 %v1254_v4  ;;  %1488 = vmatprep.mubr.bf16.mxu0 %v3551_v49 }
 0x150   : > { %v4564_v62 = vpop.permute.xlu0 %1376  ;;  %v1375_v10 = vpop.permute.xlu1 %1374 }
 0x151   : > { %v1383_v26 = vsel %vm5264_vm4, %v1373_v47, %v1375_v10  ;;  %v1384_v43 = vsel %vm5264_vm4, %v1375_v10, %v4564_v62  ;;  %vm5306_vm4 = vcmask 809984  }
 0x152   : > { %v1404_v51 = vand.u32 %v4540_v16, %v1383_v26  ;;  %v1407_v34 = vand.u32 %v4540_v16, %v1384_v43 }
 0x154   : > { %v1286_v52 = vpop.permute.xlu0 %1285  ;;  %v1272_v31 = vpop.permute.xlu1 %1271  ;;  %1458 = vmatprep.subr.bf16.mxu0 %v1407_v34 }
 0x155   : > { %v1279_v3 = vsel %vm5303_vm14, %v4190_v41, %v1272_v31  ;;  %1459 = vmatpush1.bf16.msra.mxu0 %v1404_v51  ;;  %v1287_v6 = vsel %vm5304_vm15, %v4218_v21, %v1286_v52  ;;  %vm5307_vm14 = vcmask 801792   ;;  %vm5308_vm15 = vcmask 1042432  }
 0x156   : > { %v1316_v2 = vsel %vm5305_vm5, %v4187_v29, %v1279_v3  ;;  %vm5309_vm5 = vcmask 1014784  }
 0x157   : > { %v1323_v42 = vsel %vm4038_vm2, %v1316_v2, %v1287_v6 }
 0x158   : > { %v1294_v22 = vpop.permute.xlu0 %1293  ;;  %v1290_v45 = vpop.permute.xlu1 %1289  ;;  %2875 = vmatmul.mubr.msk.bf16.vlgmr.msra.gmra.mrb[4].mxu0 %vm5265_vm6, %v4554_v27  ;;  %vm5310_vm6 = vcmask 1041408  }
 0x159   : > { %v1291_v46 = vsel %vm5306_vm4, %v4238_v48, %v1290_v45  ;;  %1529 = vmatprep.mubr.bf16.mxu0 %v3551_v49  ;;  %v1295_v41 = vsel %vm5307_vm14, %v4240_v15, %v1294_v22  ;;  %vm5312_vm4 = vmmov %vm5310_vm6  ;;  %vm5313_vm14 = vcmask 1043456  }
 0x15a   : > { %v1341_v13 = vsel %vm5308_vm15, %v1323_v42, %v1291_v46 }
 0x15b   : > { %v1348_v54 = vsel %vm4058_vm12, %v1341_v13, %v1295_v41 }
 0x15c   : > { %v716_v53 = vpop.permute.xlu0 %715  ;;  %v1298_v12 = vpop.permute.xlu1 %1297 }
 0x15d   : > { %v722_v50 = vsel %vm5309_vm5, %v4345_v32, %v716_v53  ;;  %v1077_v8 = vsel %vm5310_vm6, %v4187_v29, %v716_v53  ;;  %v1299_v20 = vsel %vm5311_vm9, %v4266_v24, %v1298_v12  ;;  %vm5314_vm6 = vmmov %vm5308_vm15  ;;  %vm5319_vm5 = vcmask 588800  }
 0x15e   : > { %v1073_v1 = vsel %vm5312_vm4, %v4214_v0, %v722_v50  ;;  %v1087_v39 = vsel %vm4038_vm2, %v1077_v8, %v4218_v21  ;;  %v1361_v19 = vsel %vm5313_vm14, %v1348_v54, %v1299_v20  ;;  %vm5316_vm9 = vmmov %vm5314_vm6  ;;  %vm5320_vm4 = vcmask 1044480   ;;  %v3318_v54 = vld [vmem:[%s5224_s5 + $0x4] ss:$8 sps:$4 sm:$0xff]  }
 0x15f   : > { %v1086_v32 = vsel %vm4038_vm2, %v1073_v1, %v4233_v61  ;;  %v1111_v29 = vsel %vm5314_vm6, %v1087_v39, %v4238_v48  ;;  %1378 = vrot.lane.b32.xlu0 %v1361_v19, %s5315_s30  ;;  %vm5317_vm2 = vmmov %vm5313_vm14  ;;  %vm5327_vm14 = vcmask 351232   ;;  %v3320_v1 = vld [vmem:[%s5224_s5] ss:$8 sps:$4 sm:$0xff]   ;;  %v3321_v39 = vld [vmem:[%s5224_s5 + $0x14] ss:$8 sps:$4 sm:$0xff]   ;;  %2039 = vmatprep.subr.bf16.mxu1 %v3318_v54  ;;  %s3554_s30 = smov 114  }
 0x160   : > { %v1107_v17 = vsel %vm5316_vm9, %v1086_v32, %v4251_v9  ;;  %v875_v47 = vpop.permute.xlu0 %874  ;;  %v1121_v0 = vsel %vm4058_vm12, %v1111_v29, %v4240_v15  ;;  %v849_v21 = vpop.permute.xlu1 %848  ;;  %vm5318_vm15 = vmmov %vm5317_vm2  ;;  %2040 = vmatpush1.bf16.msra.mxu1 %v3320_v1  ;;  %v3323_v19 = vld [vmem:[%s5224_s5 + $0x10] ss:$8 sps:$4 sm:$0xff]   ;;  %v3324_v32 = vld [vmem:[%s5224_s5 + $0x24] ss:$8 sps:$4 sm:$0xff]  }
 0x161   : > { %v1120_v11 = vsel %vm4058_vm12, %v1107_v17, %v4257_v14  ;;  %v1145_v35 = vsel %vm5317_vm2, %v1121_v0, %v4266_v24  ;;  %v855_v61 = vsel %vm850_vm3, %v4479_v33, %v849_v21  ;;  %v881_v15 = vsel %vm5319_vm5, %v4498_v23, %v875_v47  ;;  %vm5321_vm12 = vmmov %vm5320_vm4  ;;  %2041 = vmatprep.subr.bf16.mxu1 %v3321_v39  ;;  %v3326_v29 = vld [vmem:[%s5224_s5 + $0x20] ss:$8 sps:$4 sm:$0xff]   ;;  %v3327_v17 = vld [vmem:[%s5224_s5 + $0x34] ss:$8 sps:$4 sm:$0xff]  }
 0x162   : > { %v1141_v48 = vsel %vm5318_vm15, %v1120_v11, %v4278_v37  ;;  %v1155_v9 = vsel %vm4401_vm11, %v1145_v35, %v849_v21  ;;  %v3330_v0 = vld [vmem:[%s5224_s5 + $0x44] ss:$8 sps:$4 sm:$0xff]   ;;  %v3332_v21 = vld [vmem:[%s5224_s5 + $0x40] ss:$8 sps:$4 sm:$0xff]   ;;  %v3333_v11 = vld [vmem:[%s5224_s5 + $0x54] ss:$8 sps:$4 sm:$0xff]  }
 0x163   : > { %v1154_v60 = vsel %vm4401_vm11, %v1141_v48, %v855_v61  ;;  %v1179_v44 = vsel %vm5320_vm4, %v1155_v9, %v875_v47  ;;  %vm5322_vm11 = vcmask 564224   ;;  %v3329_v47 = vld [vmem:[%s5224_s5 + $0x30] ss:$8 sps:$4 sm:$0xff]   ;;  %v3336_v61 = vld [vmem:[%s5224_s5 + $0x64] ss:$8 sps:$4 sm:$0xff]   ;;  %vm5334_vm2 = vcmask 818176  }
 0x164   : > { %v925_v14 = vpop.permute.xlu0 %924  ;;  %v1175_v24 = vsel %vm5321_vm12, %v1154_v60, %v881_v15  ;;  %v899_v58 = vpop.permute.xlu1 %898  ;;  %2042 = vmatpush1.bf16.msra.mxu1 %v3323_v19  ;;  %v3335_v35 = vld [vmem:[%s5224_s5 + $0x50] ss:$8 sps:$4 sm:$0xff]   ;;  %v3338_v48 = vld [vmem:[%s5224_s5 + $0x60] ss:$8 sps:$4 sm:$0xff]   ;;  %v3339_v9 = vld [vmem:[%s5224_s5 + $0x74] ss:$8 sps:$4 sm:$0xff]  }
 0x165   : > { %v905_v33 = vsel %vm900_vm1, %v4496_v18, %v899_v58  ;;  %v1189_v37 = vsel %vm4421_vm7, %v1179_v44, %v899_v58  ;;  %v931_v59 = vsel %vm926_vm13, %v4511_v40, %v925_v14  ;;  %vm5323_vm1 = vcmask 556032   ;;  %2043 = vmatprep.subr.bf16.mxu1 %v3324_v32  ;;  %v3341_v15 = vld [vmem:[%s5224_s5 + $0x70] ss:$8 sps:$4 sm:$0xff]   ;;  %v3342_v60 = vld [vmem:[%s5224_s5 + $0x84] ss:$8 sps:$4 sm:$0xff]   ;;  %vm5335_vm15 = vmmov %vm5334_vm2 }
 0x166   : > { %v1188_v23 = vsel %vm4421_vm7, %v1175_v24, %v905_v33  ;;  %v1213_v55 = vsel %vm1181_vm0, %v1189_v37, %v925_v14  ;;  %vm5324_vm13 = vcmask 1046528   ;;  %vm5325_vm7 = vcmask 359424   ;;  %v3344_v44 = vld [vmem:[%s5224_s5 + $0x80] ss:$8 sps:$4 sm:$0xff]   ;;  %v3345_v14 = vld [vmem:[%s5224_s5 + $0x94] ss:$8 sps:$4 sm:$0xff]   ;;  %vm5338_vm12 = vmmov %vm5334_vm2 }
 0x167   : > { %v1209_v7 = vsel %vm1181_vm0, %v1188_v23, %v931_v59  ;;  %vm5326_vm0 = vmmov %vm5324_vm13  ;;  %v3347_v24 = vld [vmem:[%s5224_s5 + $0x90] ss:$8 sps:$4 sm:$0xff]   ;;  %v3348_v58 = vld [vmem:[%s5224_s5 + $0xa4] ss:$8 sps:$4 sm:$0xff]  }
 0x168   : > { %v974_v57 = vpop.permute.xlu0 %973  ;;  %v949_v63 = vpop.permute.xlu1 %948  ;;  %2044 = vmatpush1.bf16.msra.mxu1 %v3326_v29  ;;  %v3350_v33 = vld [vmem:[%s5224_s5 + $0xa0] ss:$8 sps:$4 sm:$0xff]   ;;  %v3351_v37 = vld [vmem:[%s5224_s5 + $0xb4] ss:$8 sps:$4 sm:$0xff]   ;;  %v3353_v59 = vld [vmem:[%s5224_s5 + $0xb0] ss:$8 sps:$4 sm:$0xff]  }
 0x169   : > { %v955_v4 = vsel %vm5322_vm11, %v4520_v5, %v949_v63  ;;  %v1223_v18 = vsel %vm4448_vm8, %v1213_v55, %v949_v63  ;;  %v980_v10 = vsel %vm5323_vm1, %v4532_v56, %v974_v57  ;;  %2045 = vmatprep.subr.bf16.mxu1 %v3327_v17  ;;  %v3354_v23 = vld [vmem:[%s5224_s5 + $0xc4] ss:$8 sps:$4 sm:$0xff]   ;;  %v3357_v55 = vld [vmem:[%s5224_s5 + $0xd4] ss:$8 sps:$4 sm:$0xff]   ;;  %v3359_v63 = vld [vmem:[%s5224_s5 + $0xd0] ss:$8 sps:$4 sm:$0xff]  }
 0x16a   : > { %v1222_v40 = vsel %vm4448_vm8, %v1209_v7, %v955_v4  ;;  %v1247_v26 = vsel %vm5324_vm13, %v1223_v18, %v974_v57  ;;  %vm5328_vm8 = vcmask 203776   ;;  %v3356_v57 = vld [vmem:[%s5224_s5 + $0xc0] ss:$8 sps:$4 sm:$0xff]   ;;  %v3360_v7 = vld [vmem:[%s5224_s5 + $0xe4] ss:$8 sps:$4 sm:$0xff]   ;;  %vm5339_vm11 = vmmov %vm5334_vm2  ;;  %vm2027_vm1 = vcmask 23552  }
 0x16b   : > { %v1243_v5 = vsel %vm5326_vm0, %v1222_v40, %v980_v10  ;;  %v3362_v4 = vld [vmem:[%s5224_s5 + $0xe0] ss:$8 sps:$4 sm:$0xff]   ;;  %v3363_v18 = vld [vmem:[%s5224_s5 + $0xf4] ss:$8 sps:$4 sm:$0xff]   ;;  %v3365_v10 = vld [vmem:[%s5224_s5 + $0xf0] ss:$8 sps:$4 sm:$0xff]  }
 0x16c   : > { %v998_v38 = vpop.permute.xlu1 %997  ;;  %2046 = vmatpush1.bf16.msra.mxu1 %v3329_v47  ;;  %v3366_v17 = vld [vmem:[%s5224_s5 + $0x100] ss:$8 sps:$4 sm:$0xff]   ;;  %vm5340_vm13 = vcmask 1040384   ;;  %vm5342_vm0 = vmmov %vm5334_vm2 }
 0x16d   : > { %v1004_v43 = vsel %vm5325_vm7, %v4530_v30, %v998_v38  ;;  %v1257_v51 = vsel %vm4466_vm10, %v1247_v26, %v998_v38  ;;  %2047 = vmatprep.subr.bf16.mxu1 %v3330_v0  ;;  %vm5341_vm7 = vcmask 1041408  }
 0x16e   : > { %1497 = vmatprep.subr.bf16.mxu0 %v1257_v51  ;;  %v1256_v34 = vsel %vm4466_vm10, %v1243_v5, %v1004_v43  ;;  %vm5330_vm10 = vcmask 1039360  }
 0x16f   : > { %1498 = vmatpush1.bf16.msra.mxu0 %v1256_v34  ;;  %vm5331_vm6 = vmmov %vm5330_vm10 }
 0x170   : > { %2048 = vmatpush1.bf16.msra.mxu1 %v3332_v21  ;;  %vm5332_vm9 = vmmov %vm5331_vm6  ;;  %v3371_v21 = vld [vmem:[%s5224_s5 + $0x114] ss:$8 sps:$4 sm:$0xff]  }
 0x171   : > { %2049 = vmatprep.subr.bf16.mxu1 %v3333_v11  ;;  %vm5336_vm5 = vmmov %vm5331_vm6 }
 0x172   : > { %vm5337_vm4 = vmmov %vm5336_vm5 }
 0x174   : > { %2050 = vmatpush1.bf16.msra.mxu1 %v3335_v35 }
 0x175   : > { %2051 = vmatprep.subr.bf16.mxu1 %v3336_v61 }
 0x178   : > { %2052 = vmatpush1.bf16.msra.mxu1 %v3338_v48 }
 0x179   : > { %2053 = vmatprep.subr.bf16.mxu1 %v3339_v9 }
 0x17c   : > { %2054 = vmatpush1.bf16.msra.mxu1 %v3341_v15  ;;  %v3369_v15 = vld [vmem:[%s5224_s5 + $0x110] ss:$8 sps:$4 sm:$0xff]  }
 0x17d   : > { %v4662_v2 = vpop.permute.xlu1 %1388  ;;  %2055 = vmatprep.subr.bf16.mxu1 %v3342_v60  ;;  %v3374_v60 = vld [vmem:[%s5224_s5 + $0x124] ss:$8 sps:$4 sm:$0xff]  }
 0x180   : > { %2056 = vmatpush1.bf16.msra.mxu1 %v3344_v44  ;;  %v3377_v44 = vld [vmem:[%s5224_s5 + $0x134] ss:$8 sps:$4 sm:$0xff]  }
 0x181   : > { %2057 = vmatprep.subr.bf16.mxu1 %v3345_v14  ;;  %v3375_v14 = vld [vmem:[%s5224_s5 + $0x130] ss:$8 sps:$4 sm:$0xff]  }
 0x184   : > { %2058 = vmatpush1.bf16.msra.mxu1 %v3347_v24  ;;  %v3380_v24 = vld [vmem:[%s5224_s5 + $0x144] ss:$8 sps:$4 sm:$0xff]  }
 0x185   : > { %2059 = vmatprep.subr.bf16.mxu1 %v3348_v58  ;;  %v3378_v58 = vld [vmem:[%s5224_s5 + $0x140] ss:$8 sps:$4 sm:$0xff]  }
 0x188   : > { %2060 = vmatpush1.bf16.msra.mxu1 %v3350_v33  ;;  %v3383_v33 = vld [vmem:[%s5224_s5 + $0x154] ss:$8 sps:$4 sm:$0xff]  }
 0x189   : > { %2061 = vmatprep.subr.bf16.mxu1 %v3351_v37  ;;  %v3381_v37 = vld [vmem:[%s5224_s5 + $0x150] ss:$8 sps:$4 sm:$0xff]  }
 0x18c   : > { %2062 = vmatpush1.bf16.msra.mxu1 %v3353_v59  ;;  %v3386_v59 = vld [vmem:[%s5224_s5 + $0x164] ss:$8 sps:$4 sm:$0xff]  }
 0x18d   : > { %2063 = vmatprep.subr.bf16.mxu1 %v3354_v23  ;;  %v3384_v23 = vld [vmem:[%s5224_s5 + $0x160] ss:$8 sps:$4 sm:$0xff]  }
 0x190   : > { %2064 = vmatpush1.bf16.msra.mxu1 %v3356_v57  ;;  %v3389_v57 = vld [vmem:[%s5224_s5 + $0x174] ss:$8 sps:$4 sm:$0xff]  }
 0x191   : > { %2065 = vmatprep.subr.bf16.mxu1 %v3357_v55  ;;  %v3387_v55 = vld [vmem:[%s5224_s5 + $0x170] ss:$8 sps:$4 sm:$0xff]  }
 0x194   : > { %2066 = vmatpush1.bf16.msra.mxu1 %v3359_v63  ;;  %v3392_v63 = vld [vmem:[%s5224_s5 + $0x184] ss:$8 sps:$4 sm:$0xff]  }
 0x195   : > { %2067 = vmatprep.subr.bf16.mxu1 %v3360_v7  ;;  %v3390_v7 = vld [vmem:[%s5224_s5 + $0x180] ss:$8 sps:$4 sm:$0xff]  }
 0x198   : > { %2068 = vmatpush1.bf16.msra.mxu1 %v3362_v4  ;;  %v3395_v4 = vld [vmem:[%s5224_s5 + $0x194] ss:$8 sps:$4 sm:$0xff]  }
 0x199   : > { %2069 = vmatprep.subr.bf16.mxu1 %v3363_v18  ;;  %v3393_v18 = vld [vmem:[%s5224_s5 + $0x190] ss:$8 sps:$4 sm:$0xff]  }
 0x19c   : > { %2070 = vmatpush1.bf16.msra.mxu1 %v3365_v10  ;;  %v3398_v10 = vld [vmem:[%s5224_s5 + $0x1a4] ss:$8 sps:$4 sm:$0xff]  }
 0x1d1   : > { %v1379_v56 = vpop.permute.xlu0 %1378 }
 0x1d2   : > { %v1385_v28 = vsel %vm5327_vm14, %v4564_v62, %v1379_v56  ;;  %v1413_v52 = vand.u32 %v4540_v16, %v1379_v56  ;;  %vm5346_vm14 = vcmask 1043456  }
 0x1d3   : > { %v1410_v31 = vand.u32 %v4540_v16, %v1385_v28 }
 0x1d4   : > { %1499 = vmatprep.subr.bf16.mxu0 %v1413_v52 }
 0x1d5   : > { %1500 = vmatpush1.bf16.msra.mxu0 %v1410_v31 }
 0x1d6   : > { %2352 = vmatprep.subr.bf16.mxu0 %v3551_v49 }
 0x1d8   : > { %2876 = vmatmul.mubr.msk.bf16.vlgmr.msra.gmra.mrb[8].mxu0 %vm5328_vm8, %v4554_v27  ;;  %vm5347_vm8 = vmmov %vm5337_vm4 }
 0x21b   : > { %v1449_v30 = vpop.f32.mrb[0].mxu0 }
 0x21c   : > { %v1451_v3 = vpop.f32.mrb[1].mxu0  ;;  %v4668_v45 = vadd.f32 %v1449_v30, %v4662_v2 }
 0x21d   : > { %v1453_v25 = vpop.f32.mrb[2].mxu0  ;;  %v4665_v22 = vadd.f32 %v1451_v3, %v4662_v2 }
 0x21e   : > { %v1454_v6 = vpop.f32.mrb[3].mxu0  ;;  %v1538_v12 = vmax.f32 %v4668_v45, 0.0 }
 0x21f   : > { %v1539_v41 = vmax.f32 %v4665_v22, 0.0  ;;  %v3368_v22 = vld [vmem:[%s5224_s5 + $0x104] ss:$8 sps:$4 sm:$0xff]  }
 0x220   : > { %2080 = vmatprep.subr.bf16.mxu1 %v3368_v22 }
 0x22b   : > { %v1490_v62 = vpop.f32.mrb[4].mxu0 }
 0x22c   : > { %v4671_v16 = vadd.f32 %v1490_v62, %v4662_v2  ;;  %v1492_v42 = vpop.f32.mrb[5].mxu0 }
 0x22d   : > { %v4674_v46 = vadd.f32 %v1492_v42, %v4662_v2  ;;  %v1494_v27 = vpop.f32.mrb[6].mxu0 }
 0x22e   : > { %v1540_v13 = vmax.f32 %v4671_v16, 0.0  ;;  %v1495_v53 = vpop.f32.mrb[7].mxu0 }
 0x22f   : > { %v1541_v50 = vmax.f32 %v4674_v46, 0.0 }
 0x230   : > { %v3245_v8 = vpack.i.bf16 %v1540_v13, %v1539_v41 }
 0x231   : > { %v3250_v20 = vpack.i.bf16 %v1538_v12, %v1541_v50 }
 0x232   : > { %3246 = vrot.lane.b32.xlu0 %v3245_v8, %s5329_s12 }
 0x233   : > { %3251 = vrot.lane.b32.xlu1 %v3250_v20, %s5329_s12 }
 0x2a4   : > { %v3247_v40 = vpop.permute.xlu0 %3246 }
 0x2a5   : > { %v3249_v38 = vunpack.i.h.bf16 %v3247_v40  ;;  %v3248_v26 = vunpack.i.l.bf16 %v3247_v40  ;;  %v3252_v43 = vpop.permute.xlu1 %3251  ;;  %v3396_v40 = vld [vmem:[%s5224_s5 + $0x1a0] ss:$8 sps:$4 sm:$0xff]  }
 0x2a6   : > { %v3254_v51 = vunpack.i.h.bf16 %v3252_v43  ;;  %v3253_v5 = vunpack.i.l.bf16 %v3252_v43  ;;  %v3404_v43 = vld [vmem:[%s5224_s5 + $0x1c4] ss:$8 sps:$4 sm:$0xff]  }
 0x2a7   : > { %v1564_v34 = vsel %vm5330_vm10, %v3248_v26, %v3249_v38  ;;  %vm5348_vm10 = vmmov %vm5346_vm14 }
 0x2a8   : > { %v1565_v56 = vsel %vm5331_vm6, %v3249_v38, %v3253_v5  ;;  %v1563_v28 = vsel %vm5332_vm9, %v3254_v51, %v3248_v26  ;;  %v1575_v52 = vmax.f32 %v1539_v41, %v1564_v34  ;;  %v3401_v38 = vld [vmem:[%s5224_s5 + $0x1b4] ss:$8 sps:$4 sm:$0xff]   ;;  %v3399_v26 = vld [vmem:[%s5224_s5 + $0x1b0] ss:$8 sps:$4 sm:$0xff]   ;;  %v3402_v51 = vld [vmem:[%s5224_s5 + $0x1c0] ss:$8 sps:$4 sm:$0xff]  }
 0x2a9   : > { %v1574_v31 = vmax.f32 %v1538_v12, %v1563_v28  ;;  %v4795_v30 = vmax.f32 %v1540_v13, %v1565_v56  ;;  %v3405_v34 = vld [vmem:[%s5224_s5 + $0x1d0] ss:$8 sps:$4 sm:$0xff]   ;;  %v3410_v56 = vld [vmem:[%s5224_s5 + $0x1e4] ss:$8 sps:$4 sm:$0xff]   ;;  %v3408_v28 = vld [vmem:[%s5224_s5 + $0x1e0] ss:$8 sps:$4 sm:$0xff]  }
 0x2aa   : > { %vm5349_vm6 = vmmov %vm5348_vm10 }
 0x2ab   : > { %v1531_v3 = vpop.f32.mrb[8].mxu0  ;;  %1586 = vrot.lane.b32.xlu1 %v1574_v31, %s5333_s25  ;;  %v3255_v25 = vpack.i.bf16 %v4795_v30, %v1575_v52  ;;  %vm5350_vm9 = vmmov %vm5349_vm6 }
 0x2ac   : > { %v1532_v6 = vadd.f32 %v1531_v3, %v4662_v2  ;;  %v1533_v62 = vpop.f32.mrb[9].mxu0  ;;  %v3416_v3 = vld [vmem:[%s5224_s5 + $0x204] ss:$8 sps:$4 sm:$0xff]  }
 0x2ad   : > { %v1534_v42 = vadd.f32 %v1533_v62, %v4662_v2  ;;  %v1535_v27 = vpop.f32.mrb[10].mxu0  ;;  %3256 = vrot.lane.b32.xlu0 %v3255_v25, %s5333_s25 }
 0x2ae   : > { %v1542_v45 = vmax.f32 %v1532_v6, 0.0  ;;  %v1536_v16 = vpop.f32.mrb[11].mxu0 }
 0x2af   : > { %v1543_v41 = vmax.f32 %v1534_v42, 0.0 }
 0x2b1   : > { %v3260_v13 = vpack.i.bf16 %v1543_v41, %v1542_v45 }
 0x2b3   : > { %3261 = vrot.lane.b32.xlu0 %v3260_v13, %s5329_s12 }
 0x31d   : > { %v1587_v8 = vpop.permute.xlu1 %1586 }
 0x31f   : > { %v4806_v53 = vpop.permute.xlu0 %3256 }
 0x320   : > { %v3259_v12 = vunpack.i.h.bf16 %v4806_v53  ;;  %v3258_v2 = vunpack.i.l.bf16 %v4806_v53  ;;  %v3419_v53 = vld [vmem:[%s5224_s5 + $0x214] ss:$8 sps:$4 sm:$0xff]  }
 0x322   : > { %v1600_v20 = vsel %vm5334_vm2, %v3258_v2, %v3259_v12  ;;  %v1599_v54 = vsel %vm5335_vm15, %v1587_v8, %v3258_v2  ;;  %v3414_v2 = vld [vmem:[%s5224_s5 + $0x200] ss:$8 sps:$4 sm:$0xff]   ;;  %vm5351_vm2 = vcmask 1031168   ;;  %vm5352_vm15 = vcmask 1022976  }
 0x323   : > { %v1611_v1 = vmax.f32 %v1575_v52, %v1600_v20  ;;  %v1610_v39 = vmax.f32 %v1574_v31, %v1599_v54  ;;  %v3413_v52 = vld [vmem:[%s5224_s5 + $0x1f4] ss:$8 sps:$4 sm:$0xff]   ;;  %v3411_v31 = vld [vmem:[%s5224_s5 + $0x1f0] ss:$8 sps:$4 sm:$0xff]   ;;  %v3422_v20 = vld [vmem:[%s5224_s5 + $0x224] ss:$8 sps:$4 sm:$0xff]  }
 0x324   : > { %v3420_v54 = vld [vmem:[%s5224_s5 + $0x220] ss:$8 sps:$4 sm:$0xff]  }
 0x325   : > { %v3262_v19 = vpop.permute.xlu0 %3261  ;;  %v1617_v32 = vpack.c.bf16 %v1611_v1, %v1611_v1  ;;  %v1616_v29 = vpack.c.bf16 %v1610_v39, %v1610_v39  ;;  %v3425_v1 = vld [vmem:[%s5224_s5 + $0x234] ss:$8 sps:$4 sm:$0xff]   ;;  %v3423_v39 = vld [vmem:[%s5224_s5 + $0x230] ss:$8 sps:$4 sm:$0xff]  }
 0x326   : > { %v3264_v47 = vunpack.i.h.bf16 %v3262_v19  ;;  %v3263_v0 = vunpack.i.l.bf16 %v3262_v19  ;;  %v3428_v19 = vld [vmem:[%s5224_s5 + $0x244] ss:$8 sps:$4 sm:$0xff]  }
 0x327   : > { %2071 = vmatprep.mubr.bf16.mxu1 %v1617_v32  ;;  %v3426_v32 = vld [vmem:[%s5224_s5 + $0x240] ss:$8 sps:$4 sm:$0xff]  }
 0x328   : > { %v4820_v11 = vmax.f32 %v1543_v41, %v3264_v47  ;;  %v1566_v35 = vsel %vm5336_vm5, %v3253_v5, %v3263_v0  ;;  %v1567_v61 = vsel %vm5337_vm4, %v3263_v0, %v3264_v47  ;;  %2072 = vmatmul.mubr.bf16.vlgmr.msra.gmra.mrb[0].mxu1 %v1616_v29  ;;  %v3407_v5 = vld [vmem:[%s5224_s5 + $0x1d4] ss:$8 sps:$4 sm:$0xff]   ;;  %v3434_v47 = vld [vmem:[%s5224_s5 + $0x264] ss:$8 sps:$4 sm:$0xff]   ;;  %vm5353_vm5 = vmmov %vm5349_vm6  ;;  %vm2247_vm4 = vcmask 957440  }
 0x329   : > { %v4826_v48 = vmax.f32 %v1541_v50, %v1566_v35  ;;  %v4828_v9 = vmax.f32 %v1542_v45, %v1567_v61  ;;  %2081 = vmatpush1.bf16.msra.mxu1 %v3366_v17  ;;  %v3372_v50 = vld [vmem:[%s5224_s5 + $0x120] ss:$8 sps:$4 sm:$0xff]   ;;  %v3431_v29 = vld [vmem:[%s5224_s5 + $0x254] ss:$8 sps:$4 sm:$0xff]   ;;  %v3429_v17 = vld [vmem:[%s5224_s5 + $0x250] ss:$8 sps:$4 sm:$0xff]  }
 0x32a   : > { %1596 = vrot.lane.b32.xlu0 %v4820_v11, %s5333_s25  ;;  %2082 = vmatprep.subr.bf16.mxu1 %v3371_v21  ;;  %v469_v0 = vld [vmem:[%s5224_s5 + $0x280] sm:$0x33]  ;;  %v2031_v21 = vsel %vm5340_vm13, 4294967295, %v3552_v36  ;;  %v3437_v35 = vld [vmem:[%s5224_s5 + $0x274] ss:$8 sps:$4 sm:$0xff]  }
 0x32b   : > { %v3265_v46 = vpack.i.bf16 %v4828_v9, %v4826_v48  ;;  %v2958_v61 = vcombine.high %v469_v0, %v469_v0  ;;  %v2957_v36 = vcombine.low %v469_v0, %v469_v0 }
 0x32d   : > { %3266 = vrot.lane.b32.xlu1 %v3265_v46, %s5333_s25  ;;  %2083 = vmatpush1.bf16.msra.mxu1 %v3369_v15  ;;  %v3435_v15 = vld [vmem:[%s5224_s5 + $0x270] ss:$8 sps:$4 sm:$0xff]  }
 0x32e   : > { %2084 = vmatprep.subr.bf16.mxu1 %v3374_v60 }
 0x331   : > { %2085 = vmatpush1.bf16.msra.mxu1 %v3372_v50 }
 0x332   : > { %2086 = vmatprep.subr.bf16.mxu1 %v3377_v44 }
 0x335   : > { %2087 = vmatpush1.bf16.msra.mxu1 %v3375_v14 }
 0x336   : > { %2088 = vmatprep.subr.bf16.mxu1 %v3380_v24 }
 0x339   : > { %2089 = vmatpush1.bf16.msra.mxu1 %v3378_v58 }
 0x33a   : > { %2090 = vmatprep.subr.bf16.mxu1 %v3383_v33 }
 0x33d   : > { %2091 = vmatpush1.bf16.msra.mxu1 %v3381_v37 }
 0x33e   : > { %2092 = vmatprep.subr.bf16.mxu1 %v3386_v59 }
 0x341   : > { %2093 = vmatpush1.bf16.msra.mxu1 %v3384_v23 }
 0x342   : > { %2094 = vmatprep.subr.bf16.mxu1 %v3389_v57 }
 0x345   : > { %2095 = vmatpush1.bf16.msra.mxu1 %v3387_v55 }
 0x346   : > { %2096 = vmatprep.subr.bf16.mxu1 %v3392_v63 }
 0x349   : > { %2097 = vmatpush1.bf16.msra.mxu1 %v3390_v7 }
 0x34a   : > { %2098 = vmatprep.subr.bf16.mxu1 %v3395_v4 }
 0x34d   : > { %2099 = vmatpush1.bf16.msra.mxu1 %v3393_v18 }
 0x34e   : > { %2100 = vmatprep.subr.bf16.mxu1 %v3398_v10 }
 0x351   : > { %2101 = vmatpush1.bf16.msra.mxu1 %v3396_v40 }
 0x352   : > { %2102 = vmatprep.subr.bf16.mxu1 %v3401_v38 }
 0x355   : > { %2103 = vmatpush1.bf16.msra.mxu1 %v3399_v26 }
 0x356   : > { %2104 = vmatprep.subr.bf16.mxu1 %v3404_v43 }
 0x359   : > { %2105 = vmatpush1.bf16.msra.mxu1 %v3402_v51 }
 0x35a   : > { %2106 = vmatprep.subr.bf16.mxu1 %v3407_v5 }
 0x35d   : > { %2107 = vmatpush1.bf16.msra.mxu1 %v3405_v34 }
 0x35e   : > { %2108 = vmatprep.subr.bf16.mxu1 %v3410_v56 }
 0x361   : > { %2109 = vmatpush1.bf16.msra.mxu1 %v3408_v28 }
 0x362   : > { %2110 = vmatprep.subr.bf16.mxu1 %v3413_v52 }
 0x365   : > { %2111 = vmatpush1.bf16.msra.mxu1 %v3411_v31 }
 0x366   : > { %2121 = vmatprep.subr.bf16.mxu1 %v3416_v3 }
 0x39c   : > { %v1597_v6 = vpop.permute.xlu0 %1596 }
 0x39d   : > { %v1615_v45 = vmax.f32 %v4820_v11, %v1597_v6  ;;  %v3432_v11 = vld [vmem:[%s5224_s5 + $0x260] ss:$8 sps:$4 sm:$0xff]  }
 0x39f   : > { %v3267_v25 = vpop.permute.xlu1 %3266 }
 0x3a0   : > { %v3269_v62 = vunpack.i.h.bf16 %v3267_v25  ;;  %v3268_v42 = vunpack.i.l.bf16 %v3267_v25 }
 0x3a2   : > { %v1601_v27 = vsel %vm5338_vm12, %v3259_v12, %v3268_v42  ;;  %v1602_v22 = vsel %vm5339_vm11, %v3268_v42, %v3269_v62  ;;  %v1621_v12 = vpack.c.bf16 %v1615_v45, %v1615_v45  ;;  %v1603_v46 = vsel %vm5342_vm0, %v3269_v62, %v1597_v6  ;;  %vm5354_vm12 = vmmov %vm5353_vm5  ;;  %v3440_v42 = vld [vmem:[%s5222_s3 + $0x4] ss:$8 sps:$4 sm:$0xff]  }
 0x3a3   : > { %v1612_v16 = vmax.f32 %v4795_v30, %v1601_v27  ;;  %v1613_v41 = vmax.f32 %v4826_v48, %v1602_v22  ;;  %v3417_v30 = vld [vmem:[%s5224_s5 + $0x210] ss:$8 sps:$4 sm:$0xff]   ;;  %v4980_v48 = vsel %vm5341_vm7, %v2031_v21, 0  ;;  %v1614_v44 = vmax.f32 %v4828_v9, %v1603_v46 }
 0x3a4   : > { %v2037_v60 = vand.u32 %v2958_v61, %v4980_v48  ;;  %v2034_v50 = vand.u32 %v2957_v36, %v4980_v48  ;;  %vm2251_vm11 = vcmask 949248   ;;  %vm2255_vm7 = vcmask 941056  }
 0x3a5   : > { %v1619_v13 = vpack.c.bf16 %v1613_v41, %v1613_v41  ;;  %v1618_v8 = vpack.c.bf16 %v1612_v16, %v1612_v16  ;;  %v1620_v14 = vpack.c.bf16 %v1614_v44, %v1614_v44  ;;  %vm2259_vm0 = vcmask 932864  }
 0x3a7   : > { %2112 = vmatprep.mubr.bf16.mxu1 %v1619_v13 }
 0x3a8   : > { %2113 = vmatmul.mubr.bf16.vlgmr.msra.gmra.mrb[0].mxu1 %v1618_v8 }
 0x3a9   : > { %2122 = vmatpush1.bf16.msra.mxu1 %v3414_v2  ;;  %2959 = vmatprep.mubr.msk.bf16.mxu1 %vm2027_vm1, %v1621_v12  ;;  %vm5355_vm1 = vmmov %vm5353_vm5 }
 0x3aa   : > { %2123 = vmatprep.subr.bf16.mxu1 %v3419_v53  ;;  %vm5356_vm13 = vmmov %vm5355_vm1 }
 0x3ad   : > { %2124 = vmatpush1.bf16.msra.mxu1 %v3417_v30 }
 0x3ae   : > { %2125 = vmatprep.subr.bf16.mxu1 %v3422_v20 }
 0x3b1   : > { %2126 = vmatpush1.bf16.msra.mxu1 %v3420_v54 }
 0x3b2   : > { %2127 = vmatprep.subr.bf16.mxu1 %v3425_v1  ;;  %v388_v1 = vld [vmem:[%s5223_s4 + $0x8] sm:$0xff] }
 0x3b5   : > { %2128 = vmatpush1.bf16.msra.mxu1 %v3423_v39 }
 0x3b6   : > { %2129 = vmatprep.subr.bf16.mxu1 %v3428_v19 }
 0x3b9   : > { %2130 = vmatpush1.bf16.msra.mxu1 %v3426_v32 }
 0x3ba   : > { %2131 = vmatprep.subr.bf16.mxu1 %v3431_v29  ;;  %v387_v29 = vld [vmem:[%s5223_s4] sm:$0xff] }
 0x3bd   : > { %2132 = vmatpush1.bf16.msra.mxu1 %v3429_v17 }
 0x3be   : > { %2133 = vmatprep.subr.bf16.mxu1 %v3434_v47 }
 0x3c1   : > { %2134 = vmatpush1.bf16.msra.mxu1 %v3432_v11 }
 0x3c2   : > { %2135 = vmatprep.subr.bf16.mxu1 %v3437_v35 }
 0x3c5   : > { %2136 = vmatpush1.bf16.msra.mxu1 %v3435_v15 }
 0x3c6   : > { %2137 = vmatprep.subr.bf16.mxu1 %v2037_v60 }
 0x3c9   : > { %2138 = vmatpush1.bf16.msra.mxu1 %v2034_v50 }
 0x3cc   : > { %2154 = vmatmul.mubr.bf16.vlgmr.msra.gmra.mrb[0].mxu1 %v1620_v14 }
 0x49f   : > { %v2155_v24 = vpop.f32.mrb[0].mxu1 }
 0x4a0   : > { %v2162_v58 = vpack.c.bf16 %v2155_v24, %v2155_v24  ;;  %v2157_v33 = vpop.f32.mrb[1].mxu1 }
 0x4a1   : > { %v2159_v37 = vpop.f32.mrb[2].mxu1  ;;  %v2163_v23 = vpack.c.bf16 %v2157_v33, %v2157_v33 }
 0x4a2   : > { %2243 = vrot.lane.b32.xlu0 %v2162_v58, %s3553_s2  ;;  %2168 = vrot.lane.b32.xlu1 %v2162_v58, %s5343_s29  ;;  %v2160_v59 = vpop.f32.mrb[3].mxu1  ;;  %v2165_v57 = vrot.slane %v2162_v58, 4 }
 0x4a3   : > { %v2195_v9 = vrot.slane %v2163_v23, 4 }
 0x4a6   : > { %2170 = vrot.lane.b32.xlu0 %v2165_v57, %s5344_s14  ;;  %2237 = vrot.lane.b32.xlu1 %v2163_v23, %s5343_s29  ;;  %s5345_s29 = smov 101  }
 0x4aa   : > { %2178 = vrot.lane.b32.xlu0 %v2165_v57, %s3554_s30  ;;  %2245 = vrot.lane.b32.xlu1 %v2163_v23, %s3553_s2  ;;  %s3561_s2 = smov 102  }
 0x4ae   : > { %2166 = vrot.lane.b32.xlu1 %v2165_v57, %s5329_s12  ;;  %2234 = vrot.lane.b32.xlu0 %v2195_v9, %s5329_s12 }
 0x4b2   : > { %2176 = vrot.lane.b32.xlu1 %v2162_v58, %s3555_s0  ;;  %2240 = vrot.lane.b32.xlu0 %v2195_v9, %s5344_s14  ;;  %s3562_s14 = smov 92  }
 0x4b6   : > { %2174 = vrot.lane.b32.xlu1 %v2165_v57, %s3556_s1  ;;  %2249 = vrot.lane.b32.xlu0 %v2195_v9, %s3556_s1 }
 0x4ba   : > { %2253 = vrot.lane.b32.xlu1 %v2163_v23, %s3555_s0  ;;  %2257 = vrot.lane.b32.xlu0 %v2195_v9, %s3554_s30 }
 0x4be   : > { %2180 = vrot.lane.b32.xlu1 %v2162_v58, %s3557_s13  ;;  %2261 = vrot.lane.b32.xlu0 %v2163_v23, %s3557_s13  ;;  %s3566_s13 = smov 32  }
 0x4c2   : > { %2172 = vrot.lane.b32.xlu1 %v2162_v58, %s5286_s15  ;;  %2182 = vrot.lane.b32.xlu0 %v2165_v57, %s3558_s16  ;;  %s3563_s15 = smov 91  }
 0x4c6   : > { %2184 = vrot.lane.b32.xlu1 %v2162_v58, %s3559_s22  ;;  %2186 = vrot.lane.b32.xlu0 %v2165_v57, %s3560_s24  ;;  %s3567_s22 = smov 16  }
 0x4ca   : > { %2188 = vrot.lane.b32.xlu1 %v2162_v58, %s3561_s2  ;;  %2190 = vrot.lane.b32.xlu0 %v2165_v57, %s5345_s29 }
 0x4ce   : > { %2196 = vrot.lane.b32.xlu1 %v2165_v57, %s3562_s14  ;;  %2198 = vrot.lane.b32.xlu0 %v2195_v9, %s3562_s14  ;;  %s3569_s14 = smov 48  }
 0x4d2   : > { %2192 = vrot.lane.b32.xlu1 %v2162_v58, %s5333_s25  ;;  %s3570_s25 = smov 80  }
 0x514   : > { %v2244_v55 = vpop.permute.xlu0 %2243  ;;  %v2169_v63 = vpop.permute.xlu1 %2168 }
 0x518   : > { %v2171_v7 = vpop.permute.xlu0 %2170  ;;  %v2238_v4 = vpop.permute.xlu1 %2237 }
 0x519   : > { %v2208_v28 = vsel %vm5350_vm9, %v2169_v63, %v2171_v7  ;;  %v2239_v52 = vsel %vm5351_vm2, %v2169_v63, %v2238_v4  ;;  %vm5360_vm9 = vmmov %vm5355_vm1 }
 0x51a   : > { %vm5361_vm2 = vmmov %vm5355_vm1 }
 0x51c   : > { %v5001_v18 = vpop.permute.xlu0 %2178  ;;  %v2246_v10 = vpop.permute.xlu1 %2245 }
 0x51d   : > { %v2248_v27 = vsel %vm2247_vm4, %v2244_v55, %v2246_v10  ;;  %vm5364_vm4 = vmmov %vm5355_vm1 }
 0x520   : > { %v2167_v40 = vpop.permute.xlu1 %2166  ;;  %v2235_v38 = vpop.permute.xlu0 %2234 }
 0x521   : > { %v2204_v26 = vsel %vm5346_vm14, %v2162_v58, %v2167_v40  ;;  %v2236_v43 = vsel %vm5347_vm8, %v2167_v40, %v2235_v38  ;;  %v2269_v51 = vsel %vm5348_vm10, %v2163_v23, %v2235_v38  ;;  %vm5357_vm14 = vcmask 588800   ;;  %vm5358_vm8 = vmmov %vm5355_vm1  ;;  %v3442_v38 = vld [vmem:[%s5222_s3] ss:$8 sps:$4 sm:$0xff]  }
 0x522   : > { %2353 = vmatpush1.bf16.msra.mxu0 %v2204_v26  ;;  %2298 = vrot.lane.b32.xlu1 %v2269_v51, %s3563_s15  ;;  %v2266_v5 = vsel %vm5349_vm6, %v2162_v58, %v2236_v43  ;;  %vm5359_vm10 = vmmov %vm5355_vm1  ;;  %vm2263_vm6 = vcmask 924672  }
 0x523   : > { %2296 = vrot.lane.b32.xlu0 %v2266_v5, %s3563_s15  ;;  %2354 = vmatprep.subr.bf16.mxu0 %v3551_v49 }
 0x524   : > { %v2177_v34 = vpop.permute.xlu1 %2176  ;;  %v2241_v56 = vpop.permute.xlu0 %2240  ;;  %2962 = vmatprep.mubr.msk.bf16.mxu0 %vm5357_vm14, %v3440_v42  ;;  %v3445_v42 = vld [vmem:[%s5225_s6 + $0x10] sm:$0xff]   ;;  %vm2555_vm14 = vcmask 130048  }
 0x525   : > { %v2242_v31 = vsel %vm5352_vm15, %v2171_v7, %v2241_v56  ;;  %v2275_v3 = vsel %vm5353_vm5, %v2238_v4, %v2241_v56  ;;  %v2216_v47 = vsel %vm5361_vm2, %v2177_v34, %v5001_v18  ;;  %vm5362_vm15 = vmmov %vm5355_vm1 }
 0x526   : > { %2355 = vmatpush1.bf16.msra.mxu0 %v2208_v28  ;;  %2302 = vrot.lane.b32.xlu1 %v2275_v3, %s3563_s15  ;;  %v2272_v25 = vsel %vm5354_vm12, %v2239_v52, %v2242_v31  ;;  %vm5363_vm5 = vmmov %vm5355_vm1  ;;  %vm2200_vm12 = vcmask 752640   ;;  %v3564_v31 = vmov 0.0   ;;  %v3444_v3 = vld [vmem:[%s5225_s6 + $0x8] sm:$0xff]  }
 0x527   : > { %2300 = vrot.lane.b32.xlu0 %v2272_v25, %s3563_s15  ;;  %2356 = vmatprep.subr.bf16.mxu0 %v3551_v49 }
 0x528   : > { %v2175_v6 = vpop.permute.xlu1 %2174  ;;  %v2250_v62 = vpop.permute.xlu0 %2249 }
 0x529   : > { %v2252_v22 = vsel %vm2251_vm11, %v2175_v6, %v2250_v62  ;;  %v2281_v45 = vsel %vm5355_vm1, %v2246_v10, %v2250_v62  ;;  %vm5365_vm11 = vmmov %vm5355_vm1  ;;  %vm2316_vm1 = vcmask 744448  }
 0x52a   : > { %2306 = vrot.lane.b32.xlu1 %v2281_v45, %s3563_s15  ;;  %v2278_v16 = vsel %vm5356_vm13, %v2248_v27, %v2252_v22  ;;  %vm5366_vm13 = vmmov %vm5361_vm2  ;;  %v3446_v27 = vld [vmem:[%s5225_s6 + $0x18] sm:$0xff]   ;;  %v3447_v22 = vld [vmem:[%s5225_s6 + $0x20] sm:$0xff]   ;;  %vm2567_vm2 = vcmask 916480  }
 0x52b   : > { %2304 = vrot.lane.b32.xlu0 %v2278_v16, %s3563_s15  ;;  %v3448_v45 = vld [vmem:[%s5225_s6 + $0x28] ss:$0 sps:$4 sm:$0x33]  }
 0x52c   : > { %v2254_v41 = vpop.permute.xlu1 %2253  ;;  %v2258_v13 = vpop.permute.xlu0 %2257  ;;  %v2454_v16 = vand.u32 %v3448_v45, %v4980_v48 }
 0x52d   : > { %v2256_v2 = vsel %vm2255_vm7, %v2177_v34, %v2254_v41  ;;  %v2260_v8 = vsel %vm2259_vm0, %v5001_v18, %v2258_v13  ;;  %v2287_v53 = vsel %vm5358_vm8, %v2254_v41, %v2258_v13  ;;  %vm3565_vm7 = vmmov 0  }
 0x52e   : > { %2310 = vrot.lane.b32.xlu1 %v2287_v53, %s3563_s15  ;;  %v2284_v12 = vsel %vm5359_vm10, %v2256_v2, %v2260_v8  ;;  %vm2449_vm0 = vcmask 678912   ;;  %vm2557_vm8 = vcmask 261120   ;;  %vm2559_vm10 = vcmask 392192  }
 0x52f   : > { %2308 = vrot.lane.b32.xlu0 %v2284_v12, %s3563_s15 }
 0x530   : > { %v2181_v30 = vpop.permute.xlu1 %2180  ;;  %v2262_v20 = vpop.permute.xlu0 %2261 }
 0x531   : > { %v2264_v54 = vsel %vm2263_vm6, %v2181_v30, %v2262_v20  ;;  %vm2561_vm6 = vcmask 523264  }
 0x532   : > { %2314 = vrot.lane.b32.xlu1 %v2262_v20, %s3563_s15 }
 0x533   : > { %2312 = vrot.lane.b32.xlu0 %v2264_v54, %s3563_s15  ;;  %s5367_s15 = smov 96  }
 0x534   : > { %v2173_v39 = vpop.permute.xlu1 %2172  ;;  %v2183_v19 = vpop.permute.xlu0 %2182 }
 0x535   : > { %v2212_v32 = vsel %vm5360_vm9, %v2173_v39, %v2175_v6  ;;  %v2220_v11 = vsel %vm5362_vm15, %v2181_v30, %v2183_v19  ;;  %v3449_v19 = vld [vmem:[%s5226_s7 + $0x40] sm:$0xff]   ;;  %vm2563_vm9 = vcmask 654336  }
 0x536   : > { %2357 = vmatpush1.bf16.msra.mxu0 %v2212_v32  ;;  %2333 = vperm.xlu1 %3244, %v388_v1   ;;  %v3450_v32 = vld [vmem:[%s5226_s7] sm:$0xff]  }
 0x537   : > { %2358 = vmatprep.subr.bf16.mxu0 %v3551_v49  ;;  %2328 = vperm.xlu0 %3270, %v387_v29   ;;  %v3451_v29 = vld [vmem:[%s5226_s7 + $0x48] sm:$0xff]  }
 0x538   : > { %v2185_v17 = vpop.permute.xlu1 %2184  ;;  %v2187_v0 = vpop.permute.xlu0 %2186 }
 0x539   : > { %v2224_v15 = vsel %vm5363_vm5, %v2185_v17, %v2187_v0  ;;  %v3452_v17 = vld [vmem:[%s5226_s7 + $0x8] sm:$0xff]   ;;  %v3454_v0 = vld [vmem:[%s5226_s7 + $0x10] sm:$0xff]  }
 0x53a   : > { %2359 = vmatpush1.bf16.msra.mxu0 %v2216_v47  ;;  %v3453_v47 = vld [vmem:[%s5226_s7 + $0x50] sm:$0xff]  }
 0x53b   : > { %2360 = vmatprep.subr.bf16.mxu0 %v3551_v49 }
 0x53c   : > { %v2189_v21 = vpop.permute.xlu1 %2188  ;;  %v2191_v35 = vpop.permute.xlu0 %2190 }
 0x53d   : > { %v2228_v36 = vsel %vm5364_vm4, %v2189_v21, %v2191_v35  ;;  %v3455_v21 = vld [vmem:[%s5226_s7 + $0x58] sm:$0xff]   ;;  %v3457_v35 = vld [vmem:[%s5226_s7 + $0x60] sm:$0xff]  }
 0x53e   : > { %2361 = vmatpush1.bf16.msra.mxu0 %v2220_v11  ;;  %v3456_v11 = vld [vmem:[%s5226_s7 + $0x18] sm:$0xff]  }
 0x53f   : > { %2362 = vmatprep.subr.bf16.mxu0 %v3551_v49 }
 0x540   : > { %v2197_v61 = vpop.permute.xlu1 %2196  ;;  %v2199_v60 = vpop.permute.xlu0 %2198 }
 0x541   : > { %v2201_v50 = vsel %vm2200_vm12, %v2197_v61, %v2199_v60  ;;  %v3458_v61 = vld [vmem:[%s5226_s7 + $0x20] sm:$0xff]   ;;  %v3460_v60 = vld [vmem:[%s5226_s7 + $0x28] sm:$0xff]  }
 0x542   : > { %2363 = vmatpush1.bf16.msra.mxu0 %v2224_v15  ;;  %v3459_v15 = vld [vmem:[%s5226_s7 + $0x68] sm:$0xff]  }
 0x543   : > { %2364 = vmatprep.subr.bf16.mxu0 %v3551_v49 }
 0x544   : > { %v2193_v46 = vpop.permute.xlu1 %2192 }
 0x545   : > { %v2232_v44 = vsel %vm5365_vm11, %v2193_v46, %v2201_v50 }
 0x546   : > { %2365 = vmatpush1.bf16.msra.mxu0 %v2228_v36 }
 0x547   : > { %2366 = vmatprep.subr.bf16.mxu0 %v3551_v49 }
 0x54a   : > { %2367 = vmatpush1.bf16.msra.mxu0 %v2232_v44 }
 0x54b   : > { %2368 = vmatprep.subr.bf16.mxu0 %v3551_v49 }
 0x594   : > { %v2299_v14 = vpop.permute.xlu1 %2298 }
 0x595   : > { %v2297_v24 = vpop.permute.xlu0 %2296 }
 0x596   : > { %v2317_v58 = vsel %vm2316_vm1, %v2297_v24, %v2299_v14 }
 0x597   : > { %2369 = vmatpush1.bf16.msra.mxu0 %v2317_v58 }
 0x598   : > { %v2303_v33 = vpop.permute.xlu1 %2302  ;;  %2370 = vmatprep.subr.bf16.mxu0 %v3551_v49 }
 0x599   : > { %v2301_v37 = vpop.permute.xlu0 %2300 }
 0x59a   : > { %v2318_v59 = vsel %vm2316_vm1, %v2301_v37, %v2303_v33 }
 0x59b   : > { %2371 = vmatpush1.bf16.msra.mxu0 %v2318_v59 }
 0x59c   : > { %v2307_v23 = vpop.permute.xlu1 %2306  ;;  %2372 = vmatprep.subr.bf16.mxu0 %v3551_v49 }
 0x59d   : > { %v2305_v57 = vpop.permute.xlu0 %2304 }
 0x59e   : > { %v2319_v9 = vsel %vm2316_vm1, %v2305_v57, %v2307_v23 }
 0x59f   : > { %2373 = vmatpush1.bf16.msra.mxu0 %v2319_v9 }
 0x5a0   : > { %v2311_v55 = vpop.permute.xlu1 %2310  ;;  %2374 = vmatprep.subr.bf16.mxu0 %v3551_v49 }
 0x5a1   : > { %v2309_v63 = vpop.permute.xlu0 %2308 }
 0x5a2   : > { %v2320_v7 = vsel %vm2316_vm1, %v2309_v63, %v2311_v55  ;;  %v3461_v63 = vld [vmem:[%s5226_s7 + $0x70] sm:$0xff]  }
 0x5a3   : > { %2375 = vmatpush1.bf16.msra.mxu0 %v2320_v7 }
 0x5a4   : > { %v2315_v4 = vpop.permute.xlu1 %2314  ;;  %2376 = vmatprep.subr.bf16.mxu0 %v3551_v49  ;;  %v3443_v49 = vld [vmem:[%s5225_s6] sm:$0xff]  }
 0x5a5   : > { %v2313_v18 = vpop.permute.xlu0 %2312 }
 0x5a6   : > { %v2321_v10 = vsel %vm2316_vm1, %v2313_v18, %v2315_v4 }
 0x5a7   : > { %v2350_v40 = vsel %vm5366_vm13, %v2321_v10, 0 }
 0x5a8   : > { %2377 = vmatpush1.bf16.msra.mxu0 %v2350_v40  ;;  %v3462_v40 = vld [vmem:[%s5226_s7 + $0x30] sm:$0xff]  }
 0x5a9   : > { %3024 = vmatprep.subr.bf16.mxu0 %v3564_v31 }
 0x5ab   : > { %2385 = vmatmul.mubr.bf16.vlgmr.msra.gmra.mrb[12].mxu0 %v3442_v38 }
 0x5ac   : > { %3025 = vmatpush3.bf16.msra.mxu0 %v3443_v49  ;;  %3036 = vmatprep.mubr.msk.bf16.mxu0 %vm3565_vm7, %v3564_v31  ;;  %v3463_v49 = vld [vmem:[%s5226_s7 + $0x78] sm:$0xff]  }
 0x5ad   : > { %3026 = vmatprep.subr.bf16.mxu0 %v3564_v31 }
 0x5b0   : > { %3027 = vmatpush3.bf16.msra.mxu0 %v3444_v3 }
 0x5b1   : > { %3028 = vmatprep.subr.bf16.mxu0 %v3564_v31 }
 0x5b4   : > { %3029 = vmatpush3.bf16.msra.mxu0 %v3445_v42 }
 0x5b5   : > { %v2334_v34 = vpop.permute.xlu1 %2333  ;;  %3030 = vmatprep.subr.bf16.mxu0 %v3564_v31 }
 0x5b6   : > { %v2329_v26 = vpop.permute.xlu0 %2328 }
 0x5b8   : > { %3031 = vmatpush3.bf16.msra.mxu0 %v3446_v27 }
 0x5b9   : > { %3032 = vmatprep.subr.bf16.mxu0 %v3564_v31 }
 0x5bc   : > { %3033 = vmatpush3.bf16.msra.mxu0 %v3447_v22 }
 0x5bd   : > { %3034 = vmatprep.subr.bf16.mxu0 %v3564_v31 }
 0x5c0   : > { %3035 = vmatpush3.bf16.msra.mxu0 %v2454_v16 }
 0x5c1   : > { %2997 = vmatprep.subr.bf16.mxu0 %v3449_v19 }
 0x67e   : > { %v2386_v43 = vpop.f32.mrb[12].mxu0 }
 0x67f   : > { %v2388_v51 = vpop.f32.mrb[13].mxu0  ;;  %v2387_v5 = vadd.f32 %v2386_v43, %v2329_v26 }
 0x680   : > { %v2389_v56 = vpop.f32.mrb[14].mxu0 }
 0x681   : > { %v2390_v28 = vadd.f32 %v2389_v56, %v2334_v34  ;;  %v2391_v52 = vpop.f32.mrb[15].mxu0  ;;  %v2393_v25 = vmax.f32 %v2387_v5, 0.0 }
 0x683   : > { %v2394_v6 = vmax.f32 %v2390_v28, 0.0  ;;  %v3464_v28 = vld [vmem:[%s5226_s7 + $0x38] sm:$0xff]  }
 0x685   : > { %v3271_v62 = vpack.i.bf16 %v2394_v6, %v2393_v25 }
 0x687   : > { %3272 = vrot.lane.b32.xlu1 %v3271_v62, %s5329_s12  ;;  %s3568_s12 = smov 64  }
 0x6f9   : > { %v3273_v41 = vpop.permute.xlu1 %3272 }
 0x6fa   : > { %v3275_v13 = vunpack.i.h.bf16 %v3273_v41  ;;  %v3274_v2 = vunpack.i.l.bf16 %v3273_v41 }
 0x6fc   : > { %v2404_v8 = vmax.f32 %v2394_v6, %v3275_v13  ;;  %v2403_v53 = vmax.f32 %v2393_v25, %v3274_v2 }
 0x6fe   : > { %v3276_v12 = vpack.i.bf16 %v2404_v8, %v2403_v53 }
 0x700   : > { %3277 = vrot.lane.b32.xlu0 %v3276_v12, %s3556_s1 }
 0x772   : > { %v3278_v30 = vpop.permute.xlu0 %3277 }
 0x773   : > { %v3280_v20 = vunpack.i.h.bf16 %v3278_v30  ;;  %v3279_v54 = vunpack.i.l.bf16 %v3278_v30 }
 0x775   : > { %v2414_v1 = vmax.f32 %v2404_v8, %v3280_v20  ;;  %v2413_v39 = vmax.f32 %v2403_v53, %v3279_v54 }
 0x777   : > { %v2415_v48 = vpack.c.bf16 %v2414_v1, %v2413_v39 }
 0x779   : > { %3037 = vmatmul.mubr.msk.bf16.vlgmr.msra.gmra.mrb[16].mxu0 %vm2449_vm0, %v2415_v48 }
 0x77a   : > { %2998 = vmatpush3.bf16.msra.mxu0 %v3450_v32 }
 0x77b   : > { %2999 = vmatprep.subr.bf16.mxu0 %v3451_v29 }
 0x77e   : > { %3000 = vmatpush3.bf16.msra.mxu0 %v3452_v17 }
 0x77f   : > { %3001 = vmatprep.subr.bf16.mxu0 %v3453_v47 }
 0x782   : > { %3002 = vmatpush3.bf16.msra.mxu0 %v3454_v0 }
 0x783   : > { %3003 = vmatprep.subr.bf16.mxu0 %v3455_v21 }
 0x786   : > { %3004 = vmatpush3.bf16.msra.mxu0 %v3456_v11 }
 0x787   : > { %3005 = vmatprep.subr.bf16.mxu0 %v3457_v35 }
 0x78a   : > { %3006 = vmatpush3.bf16.msra.mxu0 %v3458_v61 }
 0x78b   : > { %3007 = vmatprep.subr.bf16.mxu0 %v3459_v15 }
 0x78e   : > { %3008 = vmatpush3.bf16.msra.mxu0 %v3460_v60 }
 0x78f   : > { %3009 = vmatprep.subr.bf16.mxu0 %v3461_v63 }
 0x792   : > { %3010 = vmatpush3.bf16.msra.mxu0 %v3462_v40 }
 0x793   : > { %3011 = vmatprep.subr.bf16.mxu0 %v3463_v49 }
 0x796   : > { %3012 = vmatpush3.bf16.msra.mxu0 %v3464_v28 }
 0x84c   : > { %v2490_v36 = vpop.f32.mrb[16].mxu0 }
 0x84d   : > { %v3038_v46 = vpop.f32.mrb[17].mxu0  ;;  %v2502_v50 = vrot.slane %v2490_v36, 2  ;;  %v2498_v44 = vrot.slane %v2490_v36, 1  ;;  %v2510_v24 = vrot.slane %v2490_v36, 4  ;;  %v2506_v58 = vrot.slane %v2490_v36, 3 }
 0x84e   : > { %v2493_v14 = vpop.f32.mrb[18].mxu0  ;;  %v2518_v33 = vrot.slane %v2490_v36, 6  ;;  %v2514_v37 = vrot.slane %v2490_v36, 5  ;;  %v2522_v18 = vrot.slane %v2490_v36, 7 }
 0x84f   : > { %v3039_v59 = vpop.f32.mrb[19].mxu0  ;;  %v2531_v23 = vrot.slane %v2493_v14, 2  ;;  %v2527_v57 = vrot.slane %v2493_v14, 1  ;;  %v2539_v9 = vrot.slane %v2493_v14, 4  ;;  %v2535_v55 = vrot.slane %v2493_v14, 3 }
 0x850   : > { %v2547_v7 = vrot.slane %v2493_v14, 6  ;;  %v2543_v4 = vrot.slane %v2493_v14, 5  ;;  %v2551_v10 = vrot.slane %v2493_v14, 7 }
 0x851   : > { %v3286_v38 = vpack.i.bf16 %v2502_v50, %v2531_v23  ;;  %v3281_v26 = vpack.i.bf16 %v2498_v44, %v2527_v57  ;;  %v3296_v43 = vpack.i.bf16 %v2510_v24, %v2539_v9  ;;  %v3291_v51 = vpack.i.bf16 %v2506_v58, %v2535_v55  ;;  %v514_v44 = vld [vmem:[%s5228_s9] sm:$0xff] }
 0x852   : > { %v3306_v5 = vpack.i.bf16 %v2518_v33, %v2547_v7  ;;  %v3301_v34 = vpack.i.bf16 %v2514_v37, %v2543_v4  ;;  %v3311_v56 = vpack.i.bf16 %v2522_v18, %v2551_v10  ;;  %v3571_v58 = vmov 0.0|0.0   ;;  %v516_v33 = vld [vmem:[%s5228_s9 + $0x10] sm:$0xff]  ;;  %v513_v23 = vld [vmem:[%s5227_s8] sm:$0x1] }
 0x853   : > { %3287 = vrot.lane.b32.xlu0 %v3286_v38, %s3566_s13  ;;  %3282 = vrot.lane.b32.xlu1 %v3281_v26, %s3567_s22  ;;  %v518_v18 = vld [vmem:[%s5229_s10] sm:$0x1] }
 0x854   : > { %3051 = vmatprep.subr.bf16.mxu0 %v3571_v58 }
 0x857   : > { %3297 = vrot.lane.b32.xlu0 %v3296_v43, %s3568_s12  ;;  %3292 = vrot.lane.b32.xlu1 %v3291_v51, %s3569_s14 }
 0x85b   : > { %3307 = vrot.lane.b32.xlu0 %v3306_v5, %s5367_s15  ;;  %3302 = vrot.lane.b32.xlu1 %v3301_v34, %s3570_s25  ;;  %s375_s25 = sand.u32 1, %s3523_s18  }
 0x85c   : > { %s376_s30 = scalar_lea.vmem [#allocation2], %s375_s25  ;;  %s2803_s24 = scalar_lea.sflag [#allocation3], %s375_s25 }
 0x85d   : > { %s2815_s0 = sshll.u32 %s376_s30, 4  ;;  %s5178_s0 = int_to_ptr.vmem [resolvable:$true] %s2815_s0 }
 0x85e   : > { %s3469_s2 = scalar_lea.vmem %s5178_s0, 16 }
 0x85f   : > { %3312 = vrot.lane.b32.xlu1 %v3311_v56, %s3558_s16  ;;  %s2987_s16 = sshll.u32 %s3654_s21, 4  ;;  %p3470_p11 = scmp.ne.s32.totalorder %s5178_s0, %s3469_s2 }
 0x860   : > { %s5176_s1 = scalar_lea.hbm %s5230_s11, %s2987_s16  ;;  %s3572_s21 = smov [#allocation2]  }
 0x861   : > { %p3471_p12 = pnand %p3470_p11, %p3671_p5  ;;  %s3473_s29 = sshll.u32 %s3572_s21, 4  ;;  %s3474_s29 = int_to_ptr.vmem [resolvable:$false] %s3473_s29 }
 0x862   : > { %s3475_s12 = scalar_lea.vmem %s3474_s29, 32  ;;  %p3476_p0 = scmp.lt.s32.totalorder %s5178_s0, %s3474_s29 }
 0x863   : > { %p3472_p13 = pneg %p3471_p12  ;;  %p3477_p1 = scmp.lt.s32.totalorder %s3475_s12, %s3469_s2 }
 0x865   : > { %p3478_p2 = por %p3477_p1, %p3476_p0 }
 0x867   : > { %p3479_p3 = pnand %p3478_p2, %p3472_p13 }
 0x8c5   : > { %v3288_v52 = vpop.permute.xlu0 %3287  ;;  %v3283_v3 = vpop.permute.xlu1 %3282 }
 0x8c6   : > { %v3285_v25 = vunpack.i.h.bf16 %v3283_v3  ;;  %v3284_v6 = vunpack.i.l.bf16 %v3283_v3  ;;  %v3290_v62 = vunpack.i.h.bf16 %v3288_v52  ;;  %v3289_v42 = vunpack.i.l.bf16 %v3288_v52 }
 0x8c8   : > { %v2556_v27 = vsel %vm2555_vm14, %v2490_v36, %v3285_v25  ;;  %v2569_v22 = vsel %vm2555_vm14, %v2493_v14, %v3284_v6  ;;  %v515_v14 = vld [vmem:[%s5228_s9 + $0x8] sm:$0xff] }
 0x8c9   : > { %v3298_v45 = vpop.permute.xlu0 %3297  ;;  %v3293_v16 = vpop.permute.xlu1 %3292  ;;  %v2558_v53 = vsel %vm2557_vm8, %v2556_v27, %v3290_v62  ;;  %v2570_v12 = vsel %vm2557_vm8, %v2569_v22, %v3289_v42  ;;  %v3052_v24 = vpack.c.bf16 %v515_v14, %v514_v44 }
 0x8ca   : > { %v3295_v41 = vunpack.i.h.bf16 %v3293_v16  ;;  %v3294_v13 = vunpack.i.l.bf16 %v3293_v16  ;;  %v3300_v2 = vunpack.i.h.bf16 %v3298_v45  ;;  %v3299_v8 = vunpack.i.l.bf16 %v3298_v45 }
 0x8cc   : > { %v2560_v30 = vsel %vm2559_vm10, %v2558_v53, %v3295_v41  ;;  %v2571_v20 = vsel %vm2559_vm10, %v2570_v12, %v3294_v13 }
 0x8cd   : > { %v3308_v54 = vpop.permute.xlu0 %3307  ;;  %v3303_v1 = vpop.permute.xlu1 %3302  ;;  %v2562_v29 = vsel %vm2561_vm6, %v2560_v30, %v3300_v2  ;;  %v2572_v17 = vsel %vm2561_vm6, %v2571_v20, %v3299_v8 }
 0x8ce   : > { %v3305_v39 = vunpack.i.h.bf16 %v3303_v1  ;;  %v3304_v48 = vunpack.i.l.bf16 %v3303_v1  ;;  %v3310_v19 = vunpack.i.h.bf16 %v3308_v54  ;;  %v3309_v32 = vunpack.i.l.bf16 %v3308_v54 }
 0x8d0   : > { %v2564_v47 = vsel %vm2563_vm9, %v2562_v29, %v3305_v39  ;;  %v2573_v0 = vsel %vm2563_vm9, %v2572_v17, %v3304_v48 }
 0x8d1   : > { %v3313_v21 = vpop.permute.xlu1 %3312  ;;  %v2566_v61 = vsel %vm850_vm3, %v2564_v47, %v3310_v19  ;;  %v2574_v15 = vsel %vm850_vm3, %v2573_v0, %v3309_v32  ;;  %vm2788_vm3 = vcmask 73728  }
 0x8d2   : > { %v3315_v11 = vunpack.i.h.bf16 %v3313_v21  ;;  %v3314_v35 = vunpack.i.l.bf16 %v3313_v21 }
 0x8d4   : > { %v2568_v36 = vsel %vm2567_vm2, %v2566_v61, %v3315_v11  ;;  %v2575_v60 = vsel %vm2567_vm2, %v2574_v15, %v3314_v35 }
 0x8d5   : > { %v2576_v46 = vpack.c.bf16 %v2568_v36, %v2568_v36  ;;  %v2577_v50 = vpack.c.bf16 %v2575_v60, %v2575_v60 }
 0x8d7   : > { %2706 = vmatprep.mubr.bf16.mxu0 %v2577_v50 }
 0x8d8   : > { %2707 = vmatmul.mubr.bf16.vlgmr.msra.gmra.mrb[20].mxu0 %v2576_v46 }
 0x8d9   : > { %3048 = vmatprep.mubr.msk.f32.mxu0 %vm3565_vm7, %v3564_v31  ;;  %3053 = vmatpush3.bf16.msra.mxu0 %v3052_v24  ;;  %v517_v31 = vld [vmem:[%s5228_s9 + $0x18] sm:$0xff] }
 0x8da   : > { %3054 = vmatprep.subr.bf16.mxu0 %v3571_v58  ;;  %v3055_v37 = vpack.c.bf16 %v517_v31, %v516_v33 }
 0x8dd   : > { %3056 = vmatpush3.bf16.msra.mxu0 %v3055_v37 }
 0x9ab   : > { %v3013_v59 = vpop.f32.mrb[20].mxu0 }
 0x9ac   : > { %v3014_v57 = vpop.f32.mrb[21].mxu0 }
 0x9ad   : > { %v3015_v9 = vadd.f32 %v3014_v57, %v3013_v59  ;;  %v3016_v55 = vpop.f32.mrb[22].mxu0 }
 0x9ae   : > { %v3017_v63 = vpop.f32.mrb[23].mxu0 }
 0x9af   : > { %v2709_v7 = vadd.f32 %v3015_v9, %v513_v23 }
 0x9b1   : > { %v2714_v4 = vmax.f32 %v2709_v7, 0.0 }
 0x9b3   : > { %3049 = vmatmul.mubr.msk.f32.vlgmr.msra.gmra.mrb[24].mxu0 %vm2557_vm8, %v2714_v4 }
 0xa86   : > { %v2784_v10 = vpop.f32.mrb[24].mxu0 }
 0xa87   : > { %v2785_v40 = vadd.f32 %v2784_v10, %v518_v18  ;;  %v3050_v38 = vpop.f32.mrb[25].mxu0 }
 0xa89   : > { %v2789_v26 = vsel %vm2788_vm3, %v2785_v40, -inf }
 0xa8a   : > { %2790 = vmax.xlane.f32.xlu0 %v2789_v26 }
 0xb17   : > { %v2791_v43 = vpop.xlane.xlu0 %2790 }
 0xb18   : > { %v2792_v51 = vsub.f32 %v2785_v40, %v2791_v43 }
 0xb1a   : > { %v2793_v5 = vmul.f32 1.442695, %v2792_v51 }
 0xb1c   : > { %3465 = vpow2.f32 %v2793_v5 }
 0xb26   : > { %v3466_v34 = vpop.eup %3465 }
 0xb27   : > { %v2795_v56 = vsel %vm2788_vm3, %v3466_v34, 0.0 }
 0xb28   : > { %2796 = vadd.xlane.f32.xlu1 %v2795_v56 }
 0xbb5   : > { %v2797_v49 = vpop.xlane.xlu1 %2796 }
 0xbb6   : > { %3467 = vlog2.f32 %v2797_v49 }
 0xbc0   : > { %v3468_v28 = vpop.eup %3467 }
 0xbc1   : > { %v2799_v52 = vmul.f32 0.6931472, %v3468_v28 }
 0xbc3   : > { %v2800_v3 = vsub.f32 %v2792_v51, %v2799_v52 }
 0xbc5   : > { %2801 = vst.msk [vmem:[%s376_s30] sm:$0x1] %vm2788_vm3, %v2800_v3 }
 0xbc6   : > { %3482 = shalt.err (!%p3479_p3)
}
 0xbc7   : > { %s3483_s14 = scalar_lea.hbm %s5176_s1, 16  ;;  %s3487_s16 = scalar_lea.hbm %s5230_s11, 32 }
 0xbc8   : > { %p3484_p4 = scmp.ne.s32.totalorder %s5176_s1, %s3483_s14  ;;  %p3488_p9 = scmp.lt.u32.totalorder %s5176_s1, %s5230_s11 }
 0xbc9   : > { %p3489_p10 = scmp.lt.u32.totalorder %s3487_s16, %s3483_s14  ;;  %p3491_p12 = scmp.lt.u32.totalorder %s3483_s14, %s5176_s1 }
 0xbca   : > { %p3485_p7 = pnand %p3484_p4, %p3671_p5 }
 0xbcb   : > { %p3490_p11 = por %p3489_p10, %p3488_p9 }
 0xbcc   : > { %p3486_p8 = pneg %p3485_p7 }
 0xbcd   : > { %p3492_p13 = por %p3491_p12, %p3490_p11 }
 0xbcf   : > { %p3493_p0 = pnand %p3492_p13, %p3486_p8 }
 0xbd1   : > { %3496 = shalt.err (!%p3493_p0)
}
 0xbd2   : > { %3066 = dma.vmem_to_hbm [thread:$0]  (%p3671_p5), %s5178_s0, 16, %s5176_s1, %s2803_s24  }
 0xbd3 PF: > { %p3072_p1 = scmp.ge.s32.totalorder %s3531_s20, 2  ;;  %s2827_s22 = sand.u32 1, %s3519_s17  }
 0xbd4   : > { %s2828_s2 = scalar_lea.sflag [#allocation3], %s2827_s22 }
 0xbd5   : > { %p3069_p2 = pnand %p3072_p1, %p3675_p6 }
 0xbd7   : > { %3514 = dma.done.wait (!%p3069_p2), %s2828_s2, 16  }
 0xbd8   : > { %3516 = vsyncadd (!%p3069_p2), %s2828_s2, 4294967280  ;;  %p21_p3 = scmp.ge.s32.totalorder %s3658_s23, 4   ;;  %s5368_s17 = smov %s3523_s18 }
 0xbd9   : > { %s5369_s18 = smov %s3527_s19  ;;  %s5370_s19 = smov %s3669_s26 }
 0xbda   : > { %s5371_s20 = smov %s3658_s23  ;;  %23 = sbr.rel (!%p21_p3) target bundleno = 7 (0x7), region = 99 }
 0xbe1   :  { %2832 = vsyncpa [#allocation3], 1 }
 0xbe2   :  { %2834 = vsyncpa [#allocation3 + $0x1], 1 }

</bundles_post_ra>
